<compile_context>
chip_gen: v7x
topology: tpu7x:2x2x1
jax: 0.10.0
libtpu: 0.0.40
codegen_flags: <defaults>
</compile_context>

<pallas_src>
import functools
import math

import jax
import jax.numpy as jnp
from jax.experimental import pallas as pl
from jax.experimental.pallas import tpu as pltpu


# ----------------------------- Pallas kernel ------------------------------ #
def _tree_layer_kernel(x_ref, w_ref, b_ref, o_ref):
    """One batch tile.

    x_ref: (K, TB, P)  storage dtype (bf16 default); minor dims = (batch, lane)
    w_ref: (K, P)      float32, grid-invariant
    b_ref: (1, P)      float32, grid-invariant
    o_ref: (TB, P)     float32, lane-dense output slab (accumulated in place)
    """
    num_k = x_ref.shape[0]
    # Initialize with the bias, then accumulate one K-slice at a time.  This
    # never materializes a (K, TB, P) f32 temporary: each step is one (TB, P)
    # upcast + multiply-add on the VPU; the XLU stays idle.
    o_ref[...] = jnp.broadcast_to(b_ref[...], o_ref.shape)
    for k in range(num_k):                      # K is small & static -> fully
        xk = x_ref[k].astype(jnp.float32)       # unrolled, all slices static.
        wk = w_ref[pl.ds(k, 1), :]              # (1, P) f32
        o_ref[...] += xk * wk


# ------------------------------- helpers ----------------------------------- #
def _round_up(v, m):
    return ((v + m - 1) // m) * m


def _tpu_generation_profile():
    """Best-effort generation awareness.

    Returns (x_stream_vmem_budget, vmem_limit_cap, prefer_even_grid):
      * v5e / v6e: 128 MiB physical VMEM, one TensorCore -> big tile budget.
      * v7x: 64 MiB physical per TC, two TCs -> tighter budget / limit cap and
        an even grid-step count so ("parallel",) splits evenly across cores.
    Falls back to the conservative (small-VMEM) profile if probing fails.
    """
    probed = False
    small_vmem = False
    try:
        kind = jax.devices()[0].device_kind.lower().replace(" ", "")
        probed = True
        small_vmem = ("v7" in kind) or ("tpu7" in kind)
    except Exception:
        pass
    try:
        cap = int(pltpu.get_tpu_info().vmem_capacity_bytes)
        probed = True
        small_vmem = small_vmem or cap <= 64 * 1024 * 1024
    except Exception:
        pass
    if not probed:
        small_vmem = True  # conservative default
    if small_vmem:
        return 24 * 1024 * 1024, 48 * 1024 * 1024, True
    return 56 * 1024 * 1024, 100 * 1024 * 1024, False


def _choose_batch_tile(B, per_row_bytes, vmem_budget_bytes, *, sublane,
                       min_grid_steps=2, prefer_even_grid=False):
    """Pick the batch tile TB:
      * TB divides B and is a multiple of `sublane` (or TB == B),
      * the double-buffered per-row footprint fits the VMEM budget,
      * the grid keeps >= min_grid_steps steps when B allows it (pipeline
        overlap; feeds the 2nd TensorCore on v7x),
      * on v7x, the step count is even when possible (per-TC balance),
      * among those, the largest TB (big DMAs, fewest per-step overheads).
    """
    max_tb = max(1, vmem_budget_bytes // max(1, per_row_bytes))
    cands = sorted({B} | {t for t in range(sublane, B + 1, sublane) if B % t == 0},
                   reverse=True)
    fitting = [t for t in cands if t <= max_tb] or [cands[-1]]  # last resort
    pool = [t for t in fitting if B // t >= min_grid_steps] or fitting
    if prefer_even_grid:
        pool = [t for t in pool if (B // t) % 2 == 0] or pool
    return pool[0]


# --------------------------- Pallas entry point ----------------------------- #
def _tree_layer_pallas(x_kbp, w_kp, b_p):
    """Forward on the packed layout.

    x_kbp: (K, B, P) storage dtype (reduced axes leading, batch on sublane,
           kept axes lane-dense).  Producers emitting this layout directly
           pay zero relayout traffic.
    w_kp:  (K, P) float32;  b_p: (1, P) float32.
    Returns (B, P) float32.
    """
    K, B, P = x_kbp.shape
    itemsize = jnp.dtype(x_kbp.dtype).itemsize
    sublane = max(8, 32 // itemsize)              # 16 for bf16, 8 for f32
    p_pad = _round_up(P, 128)                     # non-multiple P still works
    k_pad = _round_up(K, 8)                       # (masked lanes), just padded.

    budget, limit_cap, prefer_even = _tpu_generation_profile()

    # Grid-invariant blocks (weights + bias), counted once against the budget.
    invariant_bytes = 2 * k_pad * p_pad * 4 + 2 * 8 * p_pad * 4
    # Per-batch-row footprint of the streamed, double-buffered blocks (x + out).
    per_row = 2 * K * p_pad * itemsize + 2 * p_pad * 4
    TB = _choose_batch_tile(
        B, per_row, max(per_row, budget - invariant_bytes),
        sublane=sublane, min_grid_steps=2, prefer_even_grid=prefer_even)
    assert B % TB == 0
    num_tiles = B // TB

    # Real VMEM usage of this tiling (padded minor dims, double-buffered).
    tb_x = _round_up(TB, sublane)
    tb_o = _round_up(TB, 8)
    vmem_needed = (2 * K * tb_x * p_pad * itemsize   # x block
                   + 2 * tb_o * p_pad * 4            # out block
                   + invariant_bytes)                # weights + bias blocks
    vmem_limit = int(min(limit_cap,
                         max(16 * 1024 * 1024,
                             vmem_needed + 4 * 1024 * 1024)))  # Mosaic headroom

    cost = pl.CostEstimate(
        flops=2 * B * K * P,                         # one mul + one add / elem
        transcendentals=0,
        bytes_accessed=(B * K * P * itemsize + K * P * 4 + P * 4 + B * P * 4),
    )

    return pl.pallas_call(
        _tree_layer_kernel,
        out_shape=jax.ShapeDtypeStruct((B, P), jnp.float32),
        grid_spec=pltpu.PrefetchScalarGridSpec(
            num_scalar_prefetch=0,
            grid=(num_tiles,),
            in_specs=[
                pl.BlockSpec((K, TB, P), lambda i: (0, i, 0)),   # x batch tile
                pl.BlockSpec((K, P), lambda i: (0, 0)),          # weights (invariant)
                pl.BlockSpec((1, P), lambda i: (0, 0)),          # bias    (invariant)
            ],
            out_specs=pl.BlockSpec((TB, P), lambda i: (i, 0)),
        ),
        compiler_params=pltpu.CompilerParams(
            dimension_semantics=("parallel",),
            vmem_limit_bytes=vmem_limit,
        ),
        cost_estimate=cost,
    )(x_kbp, w_kp, b_p)


# Producers that already emit the packed (K, B, P) layout should call this
# directly (no relayout pass over x at all).
tree_layer_forward_packed = jax.jit(_tree_layer_pallas)


@functools.partial(jax.jit, static_argnames=("storage_dtype",))
def tree_layer_forward(x, weights, bias, *, storage_dtype=jnp.bfloat16):
    """x: (B, s1..s7) module layout; weights: `sizes` with sizes[0] == 1;
    bias: (1, s1, s3, s4).  Returns (B, s1, s3, s4) float32.

    This convenience wrapper performs one relayout + downcast pass over x
    (fused into a single HBM round trip under jit).  For peak end-to-end
    throughput emit x in (K, B, P) `storage_dtype` upstream and call
    `tree_layer_forward_packed`.
    """
    if weights.shape[0] != 1:
        raise NotImplementedError(
            "TreeLayer Pallas kernel assumes sizes[0] == 1 "
            "(weights broadcast over the batch dimension of x).")

    B = x.shape[0]
    s1, s2, s3, s4, s5, s6, s7 = x.shape[1:]
    P = s1 * s3 * s4          # kept axes    -> lane (last) dim
    K = s2 * s5 * s6 * s7     # reduced axes -> leading (untiled) dim

    # TODO(synk): have the upstream producer emit x directly in (K, B, P)
    # storage_dtype so this relayout pass (the dominant HBM cost end-to-end
    # for this memory-bound op) disappears entirely.
    x_kbp = jnp.transpose(x, (2, 5, 6, 7, 0, 1, 3, 4)).reshape(K, B, P)
    x_kbp = x_kbp.astype(storage_dtype)
    # Weights stay f32: their traffic is ~1/B of x's; f32 keeps their precision.
    w_kp = jnp.transpose(weights[0], (1, 4, 5, 6, 0, 2, 3)).reshape(K, P)
    w_kp = w_kp.astype(jnp.float32)
    b_p = bias.reshape(1, P).astype(jnp.float32)

    out = _tree_layer_pallas(x_kbp, w_kp, b_p)
    return out.reshape(B, s1, s3, s4)


# ------------------------- deterministic parameters ------------------------ #
def init_params(sizes, key):
    """Mimic nn.init.kaiming_normal_ deterministically (activation='relu')."""
    kw, kb = jax.random.split(key)
    w_fan_in = sizes[1] * int(math.prod(sizes[2:]))
    w_std = math.sqrt(2.0 / w_fan_in)
    weights = w_std * jax.random.normal(kw, sizes, dtype=jnp.float32)

    bias_shape = (1, sizes[1], sizes[3], sizes[4])
    b_fan_in = bias_shape[1] * bias_shape[2] * bias_shape[3]
    b_std = math.sqrt(2.0 / b_fan_in)
    bias = b_std * jax.random.normal(kb, bias_shape, dtype=jnp.float32)
    return weights, bias


if __name__ == "__main__":
    # Small shapes consistent with the module's 8-D weight / 4-D bias layout.
    # P = s1*s3*s4 = 256 (lane-dense, multiple of 128); K = s2*s5*s6*s7 = 24
    # (leading, untiled -> no bf16 sublane padding).  sizes[0] = 1 so weights
    # broadcast over the batch.  B = 32 -> TB = 16 (bf16 sublane tile), 2 grid
    # steps (double-buffer overlap; both v7x TCs fed).
    sizes = (1, 4, 3, 8, 8, 2, 2, 2)
    B = 32

    key = jax.random.PRNGKey(0)
    k_x, k_p = jax.random.split(key)
    x = jax.random.normal(k_x, (B,) + sizes[1:], dtype=jnp.float32)
    weights, bias = init_params(sizes, k_p)

    y = tree_layer_forward(x, weights, bias)
    y = jax.block_until_ready(y)
    assert y.shape == (B, sizes[1], sizes[3], sizes[4])

    # Reference 1: identical math to the kernel (x stored bf16, weights f32,
    # f32 accumulation).
    xq = x.astype(jnp.bfloat16).astype(jnp.float32)
    y_ref_cast = jnp.sum(xq * weights, axis=(2, 5, 6, 7)) + bias
    assert jnp.allclose(y, y_ref_cast, atol=1e-4, rtol=1e-4), \
        "mismatch vs bf16-consistent reference"

    # Reference 2: the original f32 module semantics (loose tolerance covers
    # the bf16 storage of x; pass storage_dtype=jnp.float32 for exact f32).
    y_ref_f32 = jnp.sum(x * weights, axis=(2, 5, 6, 7)) + bias
    assert jnp.allclose(y, y_ref_f32, atol=3e-2, rtol=3e-2), \
        "mismatch vs f32 module reference"

    print("KERNEL_OK")
</pallas_src>

<mosaic_0001>
module attributes {stable_mosaic.version = 11 : i64} {
  func.func @_tree_layer_kernel(%arg0: i32, %arg1: memref<24x16x256xbf16, #tpu.memory_space<vmem>>, %arg2: memref<24x256xf32, #tpu.memory_space<vmem>>, %arg3: memref<1x256xf32, #tpu.memory_space<vmem>>, %arg4: memref<16x256xf32, #tpu.memory_space<vmem>>) attributes {dimension_semantics = [#tpu.dimension_semantics<parallel>], iteration_bounds = array<i64: 2>, scalar_prefetch = 0 : i64, scratch_operands = 0 : i64, tpu.core_type = #tpu.core_type<tc>, window_params = [{transform_indices = @transform_0, window_bounds = array<i64: 24, 16, 256>}, {pipeline_mode = #tpu.pipeline_mode<synchronous>, transform_indices = @transform_1, window_bounds = array<i64: 24, 256>}, {pipeline_mode = #tpu.pipeline_mode<synchronous>, transform_indices = @transform_2, window_bounds = array<i64: 1, 256>}, {transform_indices = @transform_3, window_bounds = array<i64: 16, 256>}]} {
    %c0 = arith.constant 0 : index
    %c0_0 = arith.constant 0 : index
    %0 = vector.load %arg3[%c0, %c0_0] : memref<1x256xf32, #tpu.memory_space<vmem>>, vector<1x256xf32>
    %1 = vector.shape_cast %0 : vector<1x256xf32> to vector<1x256xf32>
    %2 = vector.broadcast %1 : vector<1x256xf32> to vector<16x256xf32>
    %c0_1 = arith.constant 0 : index
    %c0_2 = arith.constant 0 : index
    %3 = vector.load %arg4[%c0_1, %c0_2] : memref<16x256xf32, #tpu.memory_space<vmem>>, vector<16x256xf32>
    tpu.vector_store %arg4[%c0_1, %c0_2], %2 {strides = array<i32>} : memref<16x256xf32, #tpu.memory_space<vmem>>, vector<16x256xf32>,
    %c0_3 = arith.constant 0 : index
    %c0_4 = arith.constant 0 : index
    %c0_5 = arith.constant 0 : index
    %4 = vector.load %arg1[%c0_3, %c0_4, %c0_5] : memref<24x16x256xbf16, #tpu.memory_space<vmem>>, vector<1x16x256xbf16>
    %5 = vector.shape_cast %4 : vector<1x16x256xbf16> to vector<16x256xbf16>
    %6 = arith.extf %5 : vector<16x256xbf16> to vector<16x256xf32>
    %c0_6 = arith.constant 0 : index
    %c0_7 = arith.constant 0 : index
    %7 = vector.load %arg2[%c0_6, %c0_7] : memref<24x256xf32, #tpu.memory_space<vmem>>, vector<1x256xf32>
    %c0_8 = arith.constant 0 : index
    %c0_9 = arith.constant 0 : index
    %8 = vector.load %arg4[%c0_8, %c0_9] : memref<16x256xf32, #tpu.memory_space<vmem>>, vector<16x256xf32>
    %9 = vector.broadcast %7 : vector<1x256xf32> to vector<16x256xf32>
    %10 = arith.mulf %6, %9 : vector<16x256xf32>
    %11 = arith.addf %8, %10 : vector<16x256xf32>
    %c0_10 = arith.constant 0 : index
    %c0_11 = arith.constant 0 : index
    %12 = vector.load %arg4[%c0_10, %c0_11] : memref<16x256xf32, #tpu.memory_space<vmem>>, vector<16x256xf32>
    tpu.vector_store %arg4[%c0_10, %c0_11], %11 {strides = array<i32>} : memref<16x256xf32, #tpu.memory_space<vmem>>, vector<16x256xf32>,
    %c1 = arith.constant 1 : index
    %c0_12 = arith.constant 0 : index
    %c0_13 = arith.constant 0 : index
    %13 = vector.load %arg1[%c1, %c0_12, %c0_13] : memref<24x16x256xbf16, #tpu.memory_space<vmem>>, vector<1x16x256xbf16>
    %14 = vector.shape_cast %13 : vector<1x16x256xbf16> to vector<16x256xbf16>
    %15 = arith.extf %14 : vector<16x256xbf16> to vector<16x256xf32>
    %c1_14 = arith.constant 1 : index
    %c0_15 = arith.constant 0 : index
    %16 = vector.load %arg2[%c1_14, %c0_15] : memref<24x256xf32, #tpu.memory_space<vmem>>, vector<1x256xf32>
    %c0_16 = arith.constant 0 : index
    %c0_17 = arith.constant 0 : index
    %17 = vector.load %arg4[%c0_16, %c0_17] : memref<16x256xf32, #tpu.memory_space<vmem>>, vector<16x256xf32>
    %18 = vector.broadcast %16 : vector<1x256xf32> to vector<16x256xf32>
    %19 = arith.mulf %15, %18 : vector<16x256xf32>
    %20 = arith.addf %17, %19 : vector<16x256xf32>
    %c0_18 = arith.constant 0 : index
    %c0_19 = arith.constant 0 : index
    %21 = vector.load %arg4[%c0_18, %c0_19] : memref<16x256xf32, #tpu.memory_space<vmem>>, vector<16x256xf32>
    tpu.vector_store %arg4[%c0_18, %c0_19], %20 {strides = array<i32>} : memref<16x256xf32, #tpu.memory_space<vmem>>, vector<16x256xf32>,
    %c2 = arith.constant 2 : index
    %c0_20 = arith.constant 0 : index
    %c0_21 = arith.constant 0 : index
    %22 = vector.load %arg1[%c2, %c0_20, %c0_21] : memref<24x16x256xbf16, #tpu.memory_space<vmem>>, vector<1x16x256xbf16>
    %23 = vector.shape_cast %22 : vector<1x16x256xbf16> to vector<16x256xbf16>
    %24 = arith.extf %23 : vector<16x256xbf16> to vector<16x256xf32>
    %c2_22 = arith.constant 2 : index
    %c0_23 = arith.constant 0 : index
    %25 = vector.load %arg2[%c2_22, %c0_23] : memref<24x256xf32, #tpu.memory_space<vmem>>, vector<1x256xf32>
    %c0_24 = arith.constant 0 : index
    %c0_25 = arith.constant 0 : index
    %26 = vector.load %arg4[%c0_24, %c0_25] : memref<16x256xf32, #tpu.memory_space<vmem>>, vector<16x256xf32>
    %27 = vector.broadcast %25 : vector<1x256xf32> to vector<16x256xf32>
    %28 = arith.mulf %24, %27 : vector<16x256xf32>
    %29 = arith.addf %26, %28 : vector<16x256xf32>
    %c0_26 = arith.constant 0 : index
    %c0_27 = arith.constant 0 : index
    %30 = vector.load %arg4[%c0_26, %c0_27] : memref<16x256xf32, #tpu.memory_space<vmem>>, vector<16x256xf32>
    tpu.vector_store %arg4[%c0_26, %c0_27], %29 {strides = array<i32>} : memref<16x256xf32, #tpu.memory_space<vmem>>, vector<16x256xf32>,
    %c3 = arith.constant 3 : index
    %c0_28 = arith.constant 0 : index
    %c0_29 = arith.constant 0 : index
    %31 = vector.load %arg1[%c3, %c0_28, %c0_29] : memref<24x16x256xbf16, #tpu.memory_space<vmem>>, vector<1x16x256xbf16>
    %32 = vector.shape_cast %31 : vector<1x16x256xbf16> to vector<16x256xbf16>
    %33 = arith.extf %32 : vector<16x256xbf16> to vector<16x256xf32>
    %c3_30 = arith.constant 3 : index
    %c0_31 = arith.constant 0 : index
    %34 = vector.load %arg2[%c3_30, %c0_31] : memref<24x256xf32, #tpu.memory_space<vmem>>, vector<1x256xf32>
    %c0_32 = arith.constant 0 : index
    %c0_33 = arith.constant 0 : index
    %35 = vector.load %arg4[%c0_32, %c0_33] : memref<16x256xf32, #tpu.memory_space<vmem>>, vector<16x256xf32>
    %36 = vector.broadcast %34 : vector<1x256xf32> to vector<16x256xf32>
    %37 = arith.mulf %33, %36 : vector<16x256xf32>
    %38 = arith.addf %35, %37 : vector<16x256xf32>
    %c0_34 = arith.constant 0 : index
    %c0_35 = arith.constant 0 : index
    %39 = vector.load %arg4[%c0_34, %c0_35] : memref<16x256xf32, #tpu.memory_space<vmem>>, vector<16x256xf32>
    tpu.vector_store %arg4[%c0_34, %c0_35], %38 {strides = array<i32>} : memref<16x256xf32, #tpu.memory_space<vmem>>, vector<16x256xf32>,
    %c4 = arith.constant 4 : index
    %c0_36 = arith.constant 0 : index
    %c0_37 = arith.constant 0 : index
    %40 = vector.load %arg1[%c4, %c0_36, %c0_37] : memref<24x16x256xbf16, #tpu.memory_space<vmem>>, vector<1x16x256xbf16>
    %41 = vector.shape_cast %40 : vector<1x16x256xbf16> to vector<16x256xbf16>
    %42 = arith.extf %41 : vector<16x256xbf16> to vector<16x256xf32>
    %c4_38 = arith.constant 4 : index
    %c0_39 = arith.constant 0 : index
    %43 = vector.load %arg2[%c4_38, %c0_39] : memref<24x256xf32, #tpu.memory_space<vmem>>, vector<1x256xf32>
    %c0_40 = arith.constant 0 : index
    %c0_41 = arith.constant 0 : index
    %44 = vector.load %arg4[%c0_40, %c0_41] : memref<16x256xf32, #tpu.memory_space<vmem>>, vector<16x256xf32>
    %45 = vector.broadcast %43 : vector<1x256xf32> to vector<16x256xf32>
    %46 = arith.mulf %42, %45 : vector<16x256xf32>
    %47 = arith.addf %44, %46 : vector<16x256xf32>
    %c0_42 = arith.constant 0 : index
    %c0_43 = arith.constant 0 : index
    %48 = vector.load %arg4[%c0_42, %c0_43] : memref<16x256xf32, #tpu.memory_space<vmem>>, vector<16x256xf32>
    tpu.vector_store %arg4[%c0_42, %c0_43], %47 {strides = array<i32>} : memref<16x256xf32, #tpu.memory_space<vmem>>, vector<16x256xf32>,
    %c5 = arith.constant 5 : index
    %c0_44 = arith.constant 0 : index
    %c0_45 = arith.constant 0 : index
    %49 = vector.load %arg1[%c5, %c0_44, %c0_45] : memref<24x16x256xbf16, #tpu.memory_space<vmem>>, vector<1x16x256xbf16>
    %50 = vector.shape_cast %49 : vector<1x16x256xbf16> to vector<16x256xbf16>
    %51 = arith.extf %50 : vector<16x256xbf16> to vector<16x256xf32>
    %c5_46 = arith.constant 5 : index
    %c0_47 = arith.constant 0 : index
    %52 = vector.load %arg2[%c5_46, %c0_47] : memref<24x256xf32, #tpu.memory_space<vmem>>, vector<1x256xf32>
    %c0_48 = arith.constant 0 : index
    %c0_49 = arith.constant 0 : index
    %53 = vector.load %arg4[%c0_48, %c0_49] : memref<16x256xf32, #tpu.memory_space<vmem>>, vector<16x256xf32>
    %54 = vector.broadcast %52 : vector<1x256xf32> to vector<16x256xf32>
    %55 = arith.mulf %51, %54 : vector<16x256xf32>
    %56 = arith.addf %53, %55 : vector<16x256xf32>
    %c0_50 = arith.constant 0 : index
    %c0_51 = arith.constant 0 : index
    %57 = vector.load %arg4[%c0_50, %c0_51] : memref<16x256xf32, #tpu.memory_space<vmem>>, vector<16x256xf32>
    tpu.vector_store %arg4[%c0_50, %c0_51], %56 {strides = array<i32>} : memref<16x256xf32, #tpu.memory_space<vmem>>, vector<16x256xf32>,
    %c6 = arith.constant 6 : index
    %c0_52 = arith.constant 0 : index
    %c0_53 = arith.constant 0 : index
    %58 = vector.load %arg1[%c6, %c0_52, %c0_53] : memref<24x16x256xbf16, #tpu.memory_space<vmem>>, vector<1x16x256xbf16>
    %59 = vector.shape_cast %58 : vector<1x16x256xbf16> to vector<16x256xbf16>
    %60 = arith.extf %59 : vector<16x256xbf16> to vector<16x256xf32>
    %c6_54 = arith.constant 6 : index
    %c0_55 = arith.constant 0 : index
    %61 = vector.load %arg2[%c6_54, %c0_55] : memref<24x256xf32, #tpu.memory_space<vmem>>, vector<1x256xf32>
    %c0_56 = arith.constant 0 : index
    %c0_57 = arith.constant 0 : index
    %62 = vector.load %arg4[%c0_56, %c0_57] : memref<16x256xf32, #tpu.memory_space<vmem>>, vector<16x256xf32>
    %63 = vector.broadcast %61 : vector<1x256xf32> to vector<16x256xf32>
    %64 = arith.mulf %60, %63 : vector<16x256xf32>
    %65 = arith.addf %62, %64 : vector<16x256xf32>
    %c0_58 = arith.constant 0 : index
    %c0_59 = arith.constant 0 : index
    %66 = vector.load %arg4[%c0_58, %c0_59] : memref<16x256xf32, #tpu.memory_space<vmem>>, vector<16x256xf32>
    tpu.vector_store %arg4[%c0_58, %c0_59], %65 {strides = array<i32>} : memref<16x256xf32, #tpu.memory_space<vmem>>, vector<16x256xf32>,
    %c7 = arith.constant 7 : index
    %c0_60 = arith.constant 0 : index
    %c0_61 = arith.constant 0 : index
    %67 = vector.load %arg1[%c7, %c0_60, %c0_61] : memref<24x16x256xbf16, #tpu.memory_space<vmem>>, vector<1x16x256xbf16>
    %68 = vector.shape_cast %67 : vector<1x16x256xbf16> to vector<16x256xbf16>
    %69 = arith.extf %68 : vector<16x256xbf16> to vector<16x256xf32>
    %c7_62 = arith.constant 7 : index
    %c0_63 = arith.constant 0 : index
    %70 = vector.load %arg2[%c7_62, %c0_63] : memref<24x256xf32, #tpu.memory_space<vmem>>, vector<1x256xf32>
    %c0_64 = arith.constant 0 : index
    %c0_65 = arith.constant 0 : index
    %71 = vector.load %arg4[%c0_64, %c0_65] : memref<16x256xf32, #tpu.memory_space<vmem>>, vector<16x256xf32>
    %72 = vector.broadcast %70 : vector<1x256xf32> to vector<16x256xf32>
    %73 = arith.mulf %69, %72 : vector<16x256xf32>
    %74 = arith.addf %71, %73 : vector<16x256xf32>
    %c0_66 = arith.constant 0 : index
    %c0_67 = arith.constant 0 : index
    %75 = vector.load %arg4[%c0_66, %c0_67] : memref<16x256xf32, #tpu.memory_space<vmem>>, vector<16x256xf32>
    tpu.vector_store %arg4[%c0_66, %c0_67], %74 {strides = array<i32>} : memref<16x256xf32, #tpu.memory_space<vmem>>, vector<16x256xf32>,
    %c8 = arith.constant 8 : index
    %c0_68 = arith.constant 0 : index
    %c0_69 = arith.constant 0 : index
    %76 = vector.load %arg1[%c8, %c0_68, %c0_69] : memref<24x16x256xbf16, #tpu.memory_space<vmem>>, vector<1x16x256xbf16>
    %77 = vector.shape_cast %76 : vector<1x16x256xbf16> to vector<16x256xbf16>
    %78 = arith.extf %77 : vector<16x256xbf16> to vector<16x256xf32>
    %c8_70 = arith.constant 8 : index
    %c0_71 = arith.constant 0 : index
    %79 = vector.load %arg2[%c8_70, %c0_71] : memref<24x256xf32, #tpu.memory_space<vmem>>, vector<1x256xf32>
    %c0_72 = arith.constant 0 : index
    %c0_73 = arith.constant 0 : index
    %80 = vector.load %arg4[%c0_72, %c0_73] : memref<16x256xf32, #tpu.memory_space<vmem>>, vector<16x256xf32>
    %81 = vector.broadcast %79 : vector<1x256xf32> to vector<16x256xf32>
    %82 = arith.mulf %78, %81 : vector<16x256xf32>
    %83 = arith.addf %80, %82 : vector<16x256xf32>
    %c0_74 = arith.constant 0 : index
    %c0_75 = arith.constant 0 : index
    %84 = vector.load %arg4[%c0_74, %c0_75] : memref<16x256xf32, #tpu.memory_space<vmem>>, vector<16x256xf32>
    tpu.vector_store %arg4[%c0_74, %c0_75], %83 {strides = array<i32>} : memref<16x256xf32, #tpu.memory_space<vmem>>, vector<16x256xf32>,
    %c9 = arith.constant 9 : index
    %c0_76 = arith.constant 0 : index
    %c0_77 = arith.constant 0 : index
    %85 = vector.load %arg1[%c9, %c0_76, %c0_77] : memref<24x16x256xbf16, #tpu.memory_space<vmem>>, vector<1x16x256xbf16>
    %86 = vector.shape_cast %85 : vector<1x16x256xbf16> to vector<16x256xbf16>
    %87 = arith.extf %86 : vector<16x256xbf16> to vector<16x256xf32>
    %c9_78 = arith.constant 9 : index
    %c0_79 = arith.constant 0 : index
    %88 = vector.load %arg2[%c9_78, %c0_79] : memref<24x256xf32, #tpu.memory_space<vmem>>, vector<1x256xf32>
    %c0_80 = arith.constant 0 : index
    %c0_81 = arith.constant 0 : index
    %89 = vector.load %arg4[%c0_80, %c0_81] : memref<16x256xf32, #tpu.memory_space<vmem>>, vector<16x256xf32>
    %90 = vector.broadcast %88 : vector<1x256xf32> to vector<16x256xf32>
    %91 = arith.mulf %87, %90 : vector<16x256xf32>
    %92 = arith.addf %89, %91 : vector<16x256xf32>
    %c0_82 = arith.constant 0 : index
    %c0_83 = arith.constant 0 : index
    %93 = vector.load %arg4[%c0_82, %c0_83] : memref<16x256xf32, #tpu.memory_space<vmem>>, vector<16x256xf32>
    tpu.vector_store %arg4[%c0_82, %c0_83], %92 {strides = array<i32>} : memref<16x256xf32, #tpu.memory_space<vmem>>, vector<16x256xf32>,
    %c10 = arith.constant 10 : index
    %c0_84 = arith.constant 0 : index
    %c0_85 = arith.constant 0 : index
    %94 = vector.load %arg1[%c10, %c0_84, %c0_85] : memref<24x16x256xbf16, #tpu.memory_space<vmem>>, vector<1x16x256xbf16>
    %95 = vector.shape_cast %94 : vector<1x16x256xbf16> to vector<16x256xbf16>
    %96 = arith.extf %95 : vector<16x256xbf16> to vector<16x256xf32>
    %c10_86 = arith.constant 10 : index
    %c0_87 = arith.constant 0 : index
    %97 = vector.load %arg2[%c10_86, %c0_87] : memref<24x256xf32, #tpu.memory_space<vmem>>, vector<1x256xf32>
    %c0_88 = arith.constant 0 : index
    %c0_89 = arith.constant 0 : index
    %98 = vector.load %arg4[%c0_88, %c0_89] : memref<16x256xf32, #tpu.memory_space<vmem>>, vector<16x256xf32>
    %99 = vector.broadcast %97 : vector<1x256xf32> to vector<16x256xf32>
    %100 = arith.mulf %96, %99 : vector<16x256xf32>
    %101 = arith.addf %98, %100 : vector<16x256xf32>
    %c0_90 = arith.constant 0 : index
    %c0_91 = arith.constant 0 : index
    %102 = vector.load %arg4[%c0_90, %c0_91] : memref<16x256xf32, #tpu.memory_space<vmem>>, vector<16x256xf32>
    tpu.vector_store %arg4[%c0_90, %c0_91], %101 {strides = array<i32>} : memref<16x256xf32, #tpu.memory_space<vmem>>, vector<16x256xf32>,
    %c11 = arith.constant 11 : index
    %c0_92 = arith.constant 0 : index
    %c0_93 = arith.constant 0 : index
    %103 = vector.load %arg1[%c11, %c0_92, %c0_93] : memref<24x16x256xbf16, #tpu.memory_space<vmem>>, vector<1x16x256xbf16>
    %104 = vector.shape_cast %103 : vector<1x16x256xbf16> to vector<16x256xbf16>
    %105 = arith.extf %104 : vector<16x256xbf16> to vector<16x256xf32>
    %c11_94 = arith.constant 11 : index
    %c0_95 = arith.constant 0 : index
    %106 = vector.load %arg2[%c11_94, %c0_95] : memref<24x256xf32, #tpu.memory_space<vmem>>, vector<1x256xf32>
    %c0_96 = arith.constant 0 : index
    %c0_97 = arith.constant 0 : index
    %107 = vector.load %arg4[%c0_96, %c0_97] : memref<16x256xf32, #tpu.memory_space<vmem>>, vector<16x256xf32>
    %108 = vector.broadcast %106 : vector<1x256xf32> to vector<16x256xf32>
    %109 = arith.mulf %105, %108 : vector<16x256xf32>
    %110 = arith.addf %107, %109 : vector<16x256xf32>
    %c0_98 = arith.constant 0 : index
    %c0_99 = arith.constant 0 : index
    %111 = vector.load %arg4[%c0_98, %c0_99] : memref<16x256xf32, #tpu.memory_space<vmem>>, vector<16x256xf32>
    tpu.vector_store %arg4[%c0_98, %c0_99], %110 {strides = array<i32>} : memref<16x256xf32, #tpu.memory_space<vmem>>, vector<16x256xf32>,
    %c12 = arith.constant 12 : index
    %c0_100 = arith.constant 0 : index
    %c0_101 = arith.constant 0 : index
    %112 = vector.load %arg1[%c12, %c0_100, %c0_101] : memref<24x16x256xbf16, #tpu.memory_space<vmem>>, vector<1x16x256xbf16>
    %113 = vector.shape_cast %112 : vector<1x16x256xbf16> to vector<16x256xbf16>
    %114 = arith.extf %113 : vector<16x256xbf16> to vector<16x256xf32>
    %c12_102 = arith.constant 12 : index
    %c0_103 = arith.constant 0 : index
    %115 = vector.load %arg2[%c12_102, %c0_103] : memref<24x256xf32, #tpu.memory_space<vmem>>, vector<1x256xf32>
    %c0_104 = arith.constant 0 : index
    %c0_105 = arith.constant 0 : index
    %116 = vector.load %arg4[%c0_104, %c0_105] : memref<16x256xf32, #tpu.memory_space<vmem>>, vector<16x256xf32>
    %117 = vector.broadcast %115 : vector<1x256xf32> to vector<16x256xf32>
    %118 = arith.mulf %114, %117 : vector<16x256xf32>
    %119 = arith.addf %116, %118 : vector<16x256xf32>
    %c0_106 = arith.constant 0 : index
    %c0_107 = arith.constant 0 : index
    %120 = vector.load %arg4[%c0_106, %c0_107] : memref<16x256xf32, #tpu.memory_space<vmem>>, vector<16x256xf32>
    tpu.vector_store %arg4[%c0_106, %c0_107], %119 {strides = array<i32>} : memref<16x256xf32, #tpu.memory_space<vmem>>, vector<16x256xf32>,
    %c13 = arith.constant 13 : index
    %c0_108 = arith.constant 0 : index
    %c0_109 = arith.constant 0 : index
    %121 = vector.load %arg1[%c13, %c0_108, %c0_109] : memref<24x16x256xbf16, #tpu.memory_space<vmem>>, vector<1x16x256xbf16>
    %122 = vector.shape_cast %121 : vector<1x16x256xbf16> to vector<16x256xbf16>
    %123 = arith.extf %122 : vector<16x256xbf16> to vector<16x256xf32>
    %c13_110 = arith.constant 13 : index
    %c0_111 = arith.constant 0 : index
    %124 = vector.load %arg2[%c13_110, %c0_111] : memref<24x256xf32, #tpu.memory_space<vmem>>, vector<1x256xf32>
    %c0_112 = arith.constant 0 : index
    %c0_113 = arith.constant 0 : index
    %125 = vector.load %arg4[%c0_112, %c0_113] : memref<16x256xf32, #tpu.memory_space<vmem>>, vector<16x256xf32>
    %126 = vector.broadcast %124 : vector<1x256xf32> to vector<16x256xf32>
    %127 = arith.mulf %123, %126 : vector<16x256xf32>
    %128 = arith.addf %125, %127 : vector<16x256xf32>
    %c0_114 = arith.constant 0 : index
    %c0_115 = arith.constant 0 : index
    %129 = vector.load %arg4[%c0_114, %c0_115] : memref<16x256xf32, #tpu.memory_space<vmem>>, vector<16x256xf32>
    tpu.vector_store %arg4[%c0_114, %c0_115], %128 {strides = array<i32>} : memref<16x256xf32, #tpu.memory_space<vmem>>, vector<16x256xf32>,
    %c14 = arith.constant 14 : index
    %c0_116 = arith.constant 0 : index
    %c0_117 = arith.constant 0 : index
    %130 = vector.load %arg1[%c14, %c0_116, %c0_117] : memref<24x16x256xbf16, #tpu.memory_space<vmem>>, vector<1x16x256xbf16>
    %131 = vector.shape_cast %130 : vector<1x16x256xbf16> to vector<16x256xbf16>
    %132 = arith.extf %131 : vector<16x256xbf16> to vector<16x256xf32>
    %c14_118 = arith.constant 14 : index
    %c0_119 = arith.constant 0 : index
    %133 = vector.load %arg2[%c14_118, %c0_119] : memref<24x256xf32, #tpu.memory_space<vmem>>, vector<1x256xf32>
    %c0_120 = arith.constant 0 : index
    %c0_121 = arith.constant 0 : index
    %134 = vector.load %arg4[%c0_120, %c0_121] : memref<16x256xf32, #tpu.memory_space<vmem>>, vector<16x256xf32>
    %135 = vector.broadcast %133 : vector<1x256xf32> to vector<16x256xf32>
    %136 = arith.mulf %132, %135 : vector<16x256xf32>
    %137 = arith.addf %134, %136 : vector<16x256xf32>
    %c0_122 = arith.constant 0 : index
    %c0_123 = arith.constant 0 : index
    %138 = vector.load %arg4[%c0_122, %c0_123] : memref<16x256xf32, #tpu.memory_space<vmem>>, vector<16x256xf32>
    tpu.vector_store %arg4[%c0_122, %c0_123], %137 {strides = array<i32>} : memref<16x256xf32, #tpu.memory_space<vmem>>, vector<16x256xf32>,
    %c15 = arith.constant 15 : index
    %c0_124 = arith.constant 0 : index
    %c0_125 = arith.constant 0 : index
    %139 = vector.load %arg1[%c15, %c0_124, %c0_125] : memref<24x16x256xbf16, #tpu.memory_space<vmem>>, vector<1x16x256xbf16>
    %140 = vector.shape_cast %139 : vector<1x16x256xbf16> to vector<16x256xbf16>
    %141 = arith.extf %140 : vector<16x256xbf16> to vector<16x256xf32>
    %c15_126 = arith.constant 15 : index
    %c0_127 = arith.constant 0 : index
    %142 = vector.load %arg2[%c15_126, %c0_127] : memref<24x256xf32, #tpu.memory_space<vmem>>, vector<1x256xf32>
    %c0_128 = arith.constant 0 : index
    %c0_129 = arith.constant 0 : index
    %143 = vector.load %arg4[%c0_128, %c0_129] : memref<16x256xf32, #tpu.memory_space<vmem>>, vector<16x256xf32>
    %144 = vector.broadcast %142 : vector<1x256xf32> to vector<16x256xf32>
    %145 = arith.mulf %141, %144 : vector<16x256xf32>
    %146 = arith.addf %143, %145 : vector<16x256xf32>
    %c0_130 = arith.constant 0 : index
    %c0_131 = arith.constant 0 : index
    %147 = vector.load %arg4[%c0_130, %c0_131] : memref<16x256xf32, #tpu.memory_space<vmem>>, vector<16x256xf32>
    tpu.vector_store %arg4[%c0_130, %c0_131], %146 {strides = array<i32>} : memref<16x256xf32, #tpu.memory_space<vmem>>, vector<16x256xf32>,
    %c16 = arith.constant 16 : index
    %c0_132 = arith.constant 0 : index
    %c0_133 = arith.constant 0 : index
    %148 = vector.load %arg1[%c16, %c0_132, %c0_133] : memref<24x16x256xbf16, #tpu.memory_space<vmem>>, vector<1x16x256xbf16>
    %149 = vector.shape_cast %148 : vector<1x16x256xbf16> to vector<16x256xbf16>
    %150 = arith.extf %149 : vector<16x256xbf16> to vector<16x256xf32>
    %c16_134 = arith.constant 16 : index
    %c0_135 = arith.constant 0 : index
    %151 = vector.load %arg2[%c16_134, %c0_135] : memref<24x256xf32, #tpu.memory_space<vmem>>, vector<1x256xf32>
    %c0_136 = arith.constant 0 : index
    %c0_137 = arith.constant 0 : index
    %152 = vector.load %arg4[%c0_136, %c0_137] : memref<16x256xf32, #tpu.memory_space<vmem>>, vector<16x256xf32>
    %153 = vector.broadcast %151 : vector<1x256xf32> to vector<16x256xf32>
    %154 = arith.mulf %150, %153 : vector<16x256xf32>
    %155 = arith.addf %152, %154 : vector<16x256xf32>
    %c0_138 = arith.constant 0 : index
    %c0_139 = arith.constant 0 : index
    %156 = vector.load %arg4[%c0_138, %c0_139] : memref<16x256xf32, #tpu.memory_space<vmem>>, vector<16x256xf32>
    tpu.vector_store %arg4[%c0_138, %c0_139], %155 {strides = array<i32>} : memref<16x256xf32, #tpu.memory_space<vmem>>, vector<16x256xf32>,
    %c17 = arith.constant 17 : index
    %c0_140 = arith.constant 0 : index
    %c0_141 = arith.constant 0 : index
    %157 = vector.load %arg1[%c17, %c0_140, %c0_141] : memref<24x16x256xbf16, #tpu.memory_space<vmem>>, vector<1x16x256xbf16>
    %158 = vector.shape_cast %157 : vector<1x16x256xbf16> to vector<16x256xbf16>
    %159 = arith.extf %158 : vector<16x256xbf16> to vector<16x256xf32>
    %c17_142 = arith.constant 17 : index
    %c0_143 = arith.constant 0 : index
    %160 = vector.load %arg2[%c17_142, %c0_143] : memref<24x256xf32, #tpu.memory_space<vmem>>, vector<1x256xf32>
    %c0_144 = arith.constant 0 : index
    %c0_145 = arith.constant 0 : index
    %161 = vector.load %arg4[%c0_144, %c0_145] : memref<16x256xf32, #tpu.memory_space<vmem>>, vector<16x256xf32>
    %162 = vector.broadcast %160 : vector<1x256xf32> to vector<16x256xf32>
    %163 = arith.mulf %159, %162 : vector<16x256xf32>
    %164 = arith.addf %161, %163 : vector<16x256xf32>
    %c0_146 = arith.constant 0 : index
    %c0_147 = arith.constant 0 : index
    %165 = vector.load %arg4[%c0_146, %c0_147] : memref<16x256xf32, #tpu.memory_space<vmem>>, vector<16x256xf32>
    tpu.vector_store %arg4[%c0_146, %c0_147], %164 {strides = array<i32>} : memref<16x256xf32, #tpu.memory_space<vmem>>, vector<16x256xf32>,
    %c18 = arith.constant 18 : index
    %c0_148 = arith.constant 0 : index
    %c0_149 = arith.constant 0 : index
    %166 = vector.load %arg1[%c18, %c0_148, %c0_149] : memref<24x16x256xbf16, #tpu.memory_space<vmem>>, vector<1x16x256xbf16>
    %167 = vector.shape_cast %166 : vector<1x16x256xbf16> to vector<16x256xbf16>
    %168 = arith.extf %167 : vector<16x256xbf16> to vector<16x256xf32>
    %c18_150 = arith.constant 18 : index
    %c0_151 = arith.constant 0 : index
    %169 = vector.load %arg2[%c18_150, %c0_151] : memref<24x256xf32, #tpu.memory_space<vmem>>, vector<1x256xf32>
    %c0_152 = arith.constant 0 : index
    %c0_153 = arith.constant 0 : index
    %170 = vector.load %arg4[%c0_152, %c0_153] : memref<16x256xf32, #tpu.memory_space<vmem>>, vector<16x256xf32>
    %171 = vector.broadcast %169 : vector<1x256xf32> to vector<16x256xf32>
    %172 = arith.mulf %168, %171 : vector<16x256xf32>
    %173 = arith.addf %170, %172 : vector<16x256xf32>
    %c0_154 = arith.constant 0 : index
    %c0_155 = arith.constant 0 : index
    %174 = vector.load %arg4[%c0_154, %c0_155] : memref<16x256xf32, #tpu.memory_space<vmem>>, vector<16x256xf32>
    tpu.vector_store %arg4[%c0_154, %c0_155], %173 {strides = array<i32>} : memref<16x256xf32, #tpu.memory_space<vmem>>, vector<16x256xf32>,
    %c19 = arith.constant 19 : index
    %c0_156 = arith.constant 0 : index
    %c0_157 = arith.constant 0 : index
    %175 = vector.load %arg1[%c19, %c0_156, %c0_157] : memref<24x16x256xbf16, #tpu.memory_space<vmem>>, vector<1x16x256xbf16>
    %176 = vector.shape_cast %175 : vector<1x16x256xbf16> to vector<16x256xbf16>
    %177 = arith.extf %176 : vector<16x256xbf16> to vector<16x256xf32>
    %c19_158 = arith.constant 19 : index
    %c0_159 = arith.constant 0 : index
    %178 = vector.load %arg2[%c19_158, %c0_159] : memref<24x256xf32, #tpu.memory_space<vmem>>, vector<1x256xf32>
    %c0_160 = arith.constant 0 : index
    %c0_161 = arith.constant 0 : index
    %179 = vector.load %arg4[%c0_160, %c0_161] : memref<16x256xf32, #tpu.memory_space<vmem>>, vector<16x256xf32>
    %180 = vector.broadcast %178 : vector<1x256xf32> to vector<16x256xf32>
    %181 = arith.mulf %177, %180 : vector<16x256xf32>
    %182 = arith.addf %179, %181 : vector<16x256xf32>
    %c0_162 = arith.constant 0 : index
    %c0_163 = arith.constant 0 : index
    %183 = vector.load %arg4[%c0_162, %c0_163] : memref<16x256xf32, #tpu.memory_space<vmem>>, vector<16x256xf32>
    tpu.vector_store %arg4[%c0_162, %c0_163], %182 {strides = array<i32>} : memref<16x256xf32, #tpu.memory_space<vmem>>, vector<16x256xf32>,
    %c20 = arith.constant 20 : index
    %c0_164 = arith.constant 0 : index
    %c0_165 = arith.constant 0 : index
    %184 = vector.load %arg1[%c20, %c0_164, %c0_165] : memref<24x16x256xbf16, #tpu.memory_space<vmem>>, vector<1x16x256xbf16>
    %185 = vector.shape_cast %184 : vector<1x16x256xbf16> to vector<16x256xbf16>
    %186 = arith.extf %185 : vector<16x256xbf16> to vector<16x256xf32>
    %c20_166 = arith.constant 20 : index
    %c0_167 = arith.constant 0 : index
    %187 = vector.load %arg2[%c20_166, %c0_167] : memref<24x256xf32, #tpu.memory_space<vmem>>, vector<1x256xf32>
    %c0_168 = arith.constant 0 : index
    %c0_169 = arith.constant 0 : index
    %188 = vector.load %arg4[%c0_168, %c0_169] : memref<16x256xf32, #tpu.memory_space<vmem>>, vector<16x256xf32>
    %189 = vector.broadcast %187 : vector<1x256xf32> to vector<16x256xf32>
    %190 = arith.mulf %186, %189 : vector<16x256xf32>
    %191 = arith.addf %188, %190 : vector<16x256xf32>
    %c0_170 = arith.constant 0 : index
    %c0_171 = arith.constant 0 : index
    %192 = vector.load %arg4[%c0_170, %c0_171] : memref<16x256xf32, #tpu.memory_space<vmem>>, vector<16x256xf32>
    tpu.vector_store %arg4[%c0_170, %c0_171], %191 {strides = array<i32>} : memref<16x256xf32, #tpu.memory_space<vmem>>, vector<16x256xf32>,
    %c21 = arith.constant 21 : index
    %c0_172 = arith.constant 0 : index
    %c0_173 = arith.constant 0 : index
    %193 = vector.load %arg1[%c21, %c0_172, %c0_173] : memref<24x16x256xbf16, #tpu.memory_space<vmem>>, vector<1x16x256xbf16>
    %194 = vector.shape_cast %193 : vector<1x16x256xbf16> to vector<16x256xbf16>
    %195 = arith.extf %194 : vector<16x256xbf16> to vector<16x256xf32>
    %c21_174 = arith.constant 21 : index
    %c0_175 = arith.constant 0 : index
    %196 = vector.load %arg2[%c21_174, %c0_175] : memref<24x256xf32, #tpu.memory_space<vmem>>, vector<1x256xf32>
    %c0_176 = arith.constant 0 : index
    %c0_177 = arith.constant 0 : index
    %197 = vector.load %arg4[%c0_176, %c0_177] : memref<16x256xf32, #tpu.memory_space<vmem>>, vector<16x256xf32>
    %198 = vector.broadcast %196 : vector<1x256xf32> to vector<16x256xf32>
    %199 = arith.mulf %195, %198 : vector<16x256xf32>
    %200 = arith.addf %197, %199 : vector<16x256xf32>
    %c0_178 = arith.constant 0 : index
    %c0_179 = arith.constant 0 : index
    %201 = vector.load %arg4[%c0_178, %c0_179] : memref<16x256xf32, #tpu.memory_space<vmem>>, vector<16x256xf32>
    tpu.vector_store %arg4[%c0_178, %c0_179], %200 {strides = array<i32>} : memref<16x256xf32, #tpu.memory_space<vmem>>, vector<16x256xf32>,
    %c22 = arith.constant 22 : index
    %c0_180 = arith.constant 0 : index
    %c0_181 = arith.constant 0 : index
    %202 = vector.load %arg1[%c22, %c0_180, %c0_181] : memref<24x16x256xbf16, #tpu.memory_space<vmem>>, vector<1x16x256xbf16>
    %203 = vector.shape_cast %202 : vector<1x16x256xbf16> to vector<16x256xbf16>
    %204 = arith.extf %203 : vector<16x256xbf16> to vector<16x256xf32>
    %c22_182 = arith.constant 22 : index
    %c0_183 = arith.constant 0 : index
    %205 = vector.load %arg2[%c22_182, %c0_183] : memref<24x256xf32, #tpu.memory_space<vmem>>, vector<1x256xf32>
    %c0_184 = arith.constant 0 : index
    %c0_185 = arith.constant 0 : index
    %206 = vector.load %arg4[%c0_184, %c0_185] : memref<16x256xf32, #tpu.memory_space<vmem>>, vector<16x256xf32>
    %207 = vector.broadcast %205 : vector<1x256xf32> to vector<16x256xf32>
    %208 = arith.mulf %204, %207 : vector<16x256xf32>
    %209 = arith.addf %206, %208 : vector<16x256xf32>
    %c0_186 = arith.constant 0 : index
    %c0_187 = arith.constant 0 : index
    %210 = vector.load %arg4[%c0_186, %c0_187] : memref<16x256xf32, #tpu.memory_space<vmem>>, vector<16x256xf32>
    tpu.vector_store %arg4[%c0_186, %c0_187], %209 {strides = array<i32>} : memref<16x256xf32, #tpu.memory_space<vmem>>, vector<16x256xf32>,
    %c23 = arith.constant 23 : index
    %c0_188 = arith.constant 0 : index
    %c0_189 = arith.constant 0 : index
    %211 = vector.load %arg1[%c23, %c0_188, %c0_189] : memref<24x16x256xbf16, #tpu.memory_space<vmem>>, vector<1x16x256xbf16>
    %212 = vector.shape_cast %211 : vector<1x16x256xbf16> to vector<16x256xbf16>
    %213 = arith.extf %212 : vector<16x256xbf16> to vector<16x256xf32>
    %c23_190 = arith.constant 23 : index
    %c0_191 = arith.constant 0 : index
    %214 = vector.load %arg2[%c23_190, %c0_191] : memref<24x256xf32, #tpu.memory_space<vmem>>, vector<1x256xf32>
    %c0_192 = arith.constant 0 : index
    %c0_193 = arith.constant 0 : index
    %215 = vector.load %arg4[%c0_192, %c0_193] : memref<16x256xf32, #tpu.memory_space<vmem>>, vector<16x256xf32>
    %216 = vector.broadcast %214 : vector<1x256xf32> to vector<16x256xf32>
    %217 = arith.mulf %213, %216 : vector<16x256xf32>
    %218 = arith.addf %215, %217 : vector<16x256xf32>
    %c0_194 = arith.constant 0 : index
    %c0_195 = arith.constant 0 : index
    %219 = vector.load %arg4[%c0_194, %c0_195] : memref<16x256xf32, #tpu.memory_space<vmem>>, vector<16x256xf32>
    tpu.vector_store %arg4[%c0_194, %c0_195], %218 {strides = array<i32>} : memref<16x256xf32, #tpu.memory_space<vmem>>, vector<16x256xf32>,
    return
  }
  func.func @transform_0(%arg0: i32) -> (i32, i32, i32) {
    %c0_i32 = arith.constant 0 : i32
    %c0_i32_0 = arith.constant 0 : i32
    %c0_i32_1 = arith.constant 0 : i32
    return %c0_i32, %arg0, %c0_i32_0 : i32, i32, i32
  }
  func.func @transform_1(%arg0: i32) -> (i32, i32) {
    %c0_i32 = arith.constant 0 : i32
    %c0_i32_0 = arith.constant 0 : i32
    %c0_i32_1 = arith.constant 0 : i32
    return %c0_i32, %c0_i32_0 : i32, i32
  }
  func.func @transform_2(%arg0: i32) -> (i32, i32) {
    %c0_i32 = arith.constant 0 : i32
    %c0_i32_0 = arith.constant 0 : i32
    %c0_i32_1 = arith.constant 0 : i32
    return %c0_i32, %c0_i32_0 : i32, i32
  }
  func.func @transform_3(%arg0: i32) -> (i32, i32) {
    %c0_i32 = arith.constant 0 : i32
    %c0_i32_0 = arith.constant 0 : i32
    return %arg0, %c0_i32 : i32, i32
  }
}

</mosaic_0001>

<bundles_post_ra>
// kernel: tree_layer_forward.1
= control target key start
LH: loop header
LB: loop body
LE: loop exit
PB: predicated region body
PF: predicated region fallthrough
CT: control target
= control target key end

     0   :  { %s1496_s12 = smov 0   ;;  %s1498_s13 = smov 0   ;;  %s1977_s0 = inlined_call_operand.vmem [shape: bf16[24,32,256], index: 0, kind: input, shape index: {}]   ;;  %s1978_s1 = inlined_call_operand.vmem [shape: f32[24,256], index: 1, kind: input, shape index: {}]   ;;  %s1979_s2 = inlined_call_operand.vmem [shape: f32[1,256], index: 2, kind: input, shape index: {}]   ;;  %s1980_s3 = inlined_call_operand.vmem [shape: f32[32,256], index: 3, kind: output, shape index: {}]  }
   0x1   :  { %s1500_s14 = smov 0  }
   0x2 LB: > { %s1341_s15 = sadd.s32 4294967295, %s1474_s14   ;;  %s1513_s16 = sadd.s32 1, %s1474_s14   ;;  %s1474_s14 = sphi %s1500_s14, %s1983_s14   ;;  %s1470_s13 = sphi %s1498_s13, %s1982_s13   ;;  %s1466_s12 = sphi %s1496_s12, %s1981_s12  }
   0x3   : > { %s17_s17 = ssub.s32 %s1474_s14, %s1513_s16  ;;  %s20_s18 = sadd.s32 1, %s1470_s13 }
   0x4   : > { %p18_p0 = scmp.eq.s32.totalorder %s17_s17, 0  ;;  %p27_p1 = scmp.ne.s32.totalorder %s1470_s13, %s1466_s12 }
   0x5   : > { %p28_p2 = scmp.eq.s32.totalorder %s1474_s14, 0  ;;  %p1344_p4 = scmp.ge.s32.totalorder %s1474_s14, 2 }
   0x6   : > { %s1522_s19 = scalar_select %p18_p0, %s1470_s13, %s20_s18  }
   0x7   : > { %p29_p3 = por %p28_p2, %p27_p1  ;;  %127 = sbr.rel (%p1344_p4) target bundleno = 42 (0x2a), region = 24 }
   0xe   : > { %130 = sbr.rel (!%p29_p3) target bundleno = 42 (0x2a), region = 28  ;;  %s132_s20 = sand.u32 (%p29_p3), 1, %s1470_s13  }
   0xf   : > { %s1424_s21 = sshll.u32 (%p29_p3), %s1474_s14, 4  ;;  %s1426_s22 = smul.u32 (%p29_p3), 384, %s132_s20 }
  0x10   : > { %s1530_s25 = scalar_lea.vmem (%p29_p3), %s1977_s0, %s1424_s21 }
  0x11   : > { %v260_v0 = vld [vmem:[%s1530_s25] sm:$0xff] (%p29_p3)  ;;  %v262_v1 = vld [vmem:[%s1530_s25 + $0x8] sm:$0xff] (%p29_p3)  ;;  %s1538_s26 = scalar_lea.vmem (%p29_p3), [#allocation2], %s1426_s22 }
  0x12   : > { %v264_v2 = vld [vmem:[%s1530_s25 + $0x20] sm:$0xff] (%p29_p3)  ;;  %v266_v3 = vld [vmem:[%s1530_s25 + $0x28] sm:$0xff] (%p29_p3)  ;;  %261 = vst [vmem:[%s1538_s26] sm:$0xff] (%p29_p3), %v260_v0  ;;  %263 = vst [vmem:[%s1538_s26 + $0x8] sm:$0xff] (%p29_p3), %v262_v1 }
  0x13   : > { %v268_v4 = vld [vmem:[%s1530_s25 + $0x40] sm:$0xff] (%p29_p3)  ;;  %v270_v5 = vld [vmem:[%s1530_s25 + $0x48] sm:$0xff] (%p29_p3)  ;;  %265 = vst [vmem:[%s1538_s26 + $0x10] sm:$0xff] (%p29_p3), %v264_v2  ;;  %267 = vst [vmem:[%s1538_s26 + $0x18] sm:$0xff] (%p29_p3), %v266_v3 }
  0x14   : > { %269 = vst [vmem:[%s1538_s26 + $0x20] sm:$0xff] (%p29_p3), %v268_v4  ;;  %271 = vst [vmem:[%s1538_s26 + $0x28] sm:$0xff] (%p29_p3), %v270_v5  ;;  %v272_v6 = vld [vmem:[%s1530_s25 + $0x60] sm:$0xff] (%p29_p3)  ;;  %v274_v7 = vld [vmem:[%s1530_s25 + $0x68] sm:$0xff] (%p29_p3) }
  0x15   : > { %v276_v8 = vld [vmem:[%s1530_s25 + $0x80] sm:$0xff]  ;;  %273 = vst [vmem:[%s1538_s26 + $0x30] sm:$0xff] %v272_v6  ;;  %275 = vst [vmem:[%s1538_s26 + $0x38] sm:$0xff] %v274_v7  ;;  %v278_v9 = vld [vmem:[%s1530_s25 + $0x88] sm:$0xff] }
  0x16   : > { %277 = vst [vmem:[%s1538_s26 + $0x40] sm:$0xff] %v276_v8  ;;  %v280_v10 = vld [vmem:[%s1530_s25 + $0xa0] sm:$0xff]  ;;  %v282_v11 = vld [vmem:[%s1530_s25 + $0xa8] sm:$0xff]  ;;  %279 = vst [vmem:[%s1538_s26 + $0x48] sm:$0xff] %v278_v9 }
  0x17   : > { %281 = vst [vmem:[%s1538_s26 + $0x50] sm:$0xff] %v280_v10  ;;  %283 = vst [vmem:[%s1538_s26 + $0x58] sm:$0xff] %v282_v11  ;;  %v284_v12 = vld [vmem:[%s1530_s25 + $0xc0] sm:$0xff]  ;;  %v286_v13 = vld [vmem:[%s1530_s25 + $0xc8] sm:$0xff] }
  0x18   : > { %v288_v14 = vld [vmem:[%s1530_s25 + $0xe0] sm:$0xff]  ;;  %285 = vst [vmem:[%s1538_s26 + $0x60] sm:$0xff] %v284_v12  ;;  %287 = vst [vmem:[%s1538_s26 + $0x68] sm:$0xff] %v286_v13  ;;  %v290_v15 = vld [vmem:[%s1530_s25 + $0xe8] sm:$0xff] }
  0x19   : > { %289 = vst [vmem:[%s1538_s26 + $0x70] sm:$0xff] %v288_v14  ;;  %v292_v16 = vld [vmem:[%s1530_s25 + $0x100] sm:$0xff]  ;;  %v294_v17 = vld [vmem:[%s1530_s25 + $0x108] sm:$0xff]  ;;  %291 = vst [vmem:[%s1538_s26 + $0x78] sm:$0xff] %v290_v15 }
  0x1a   : > { %293 = vst [vmem:[%s1538_s26 + $0x80] sm:$0xff] %v292_v16  ;;  %295 = vst [vmem:[%s1538_s26 + $0x88] sm:$0xff] %v294_v17  ;;  %v296_v18 = vld [vmem:[%s1530_s25 + $0x120] sm:$0xff]  ;;  %v298_v19 = vld [vmem:[%s1530_s25 + $0x128] sm:$0xff] }
  0x1b   : > { %v300_v20 = vld [vmem:[%s1530_s25 + $0x140] sm:$0xff]  ;;  %297 = vst [vmem:[%s1538_s26 + $0x90] sm:$0xff] %v296_v18  ;;  %299 = vst [vmem:[%s1538_s26 + $0x98] sm:$0xff] %v298_v19  ;;  %v302_v21 = vld [vmem:[%s1530_s25 + $0x148] sm:$0xff] }
  0x1c   : > { %301 = vst [vmem:[%s1538_s26 + $0xa0] sm:$0xff] %v300_v20  ;;  %v304_v22 = vld [vmem:[%s1530_s25 + $0x160] sm:$0xff]  ;;  %v306_v23 = vld [vmem:[%s1530_s25 + $0x168] sm:$0xff]  ;;  %303 = vst [vmem:[%s1538_s26 + $0xa8] sm:$0xff] %v302_v21 }
  0x1d   : > { %305 = vst [vmem:[%s1538_s26 + $0xb0] sm:$0xff] %v304_v22  ;;  %307 = vst [vmem:[%s1538_s26 + $0xb8] sm:$0xff] %v306_v23  ;;  %v308_v24 = vld [vmem:[%s1530_s25 + $0x180] sm:$0xff]  ;;  %v310_v25 = vld [vmem:[%s1530_s25 + $0x188] sm:$0xff] }
  0x1e   : > { %v312_v26 = vld [vmem:[%s1530_s25 + $0x1a0] sm:$0xff]  ;;  %309 = vst [vmem:[%s1538_s26 + $0xc0] sm:$0xff] %v308_v24  ;;  %311 = vst [vmem:[%s1538_s26 + $0xc8] sm:$0xff] %v310_v25  ;;  %v314_v27 = vld [vmem:[%s1530_s25 + $0x1a8] sm:$0xff] }
  0x1f   : > { %313 = vst [vmem:[%s1538_s26 + $0xd0] sm:$0xff] %v312_v26  ;;  %v316_v28 = vld [vmem:[%s1530_s25 + $0x1c0] sm:$0xff]  ;;  %v318_v29 = vld [vmem:[%s1530_s25 + $0x1c8] sm:$0xff]  ;;  %315 = vst [vmem:[%s1538_s26 + $0xd8] sm:$0xff] %v314_v27 }
  0x20   : > { %317 = vst [vmem:[%s1538_s26 + $0xe0] sm:$0xff] %v316_v28  ;;  %319 = vst [vmem:[%s1538_s26 + $0xe8] sm:$0xff] %v318_v29  ;;  %v320_v30 = vld [vmem:[%s1530_s25 + $0x1e0] sm:$0xff]  ;;  %v322_v31 = vld [vmem:[%s1530_s25 + $0x1e8] sm:$0xff] }
  0x21   : > { %v324_v32 = vld [vmem:[%s1530_s25 + $0x200] sm:$0xff]  ;;  %321 = vst [vmem:[%s1538_s26 + $0xf0] sm:$0xff] %v320_v30  ;;  %323 = vst [vmem:[%s1538_s26 + $0xf8] sm:$0xff] %v322_v31  ;;  %v326_v33 = vld [vmem:[%s1530_s25 + $0x208] sm:$0xff] }
  0x22   : > { %325 = vst [vmem:[%s1538_s26 + $0x100] sm:$0xff] %v324_v32  ;;  %v328_v34 = vld [vmem:[%s1530_s25 + $0x220] sm:$0xff]  ;;  %v330_v35 = vld [vmem:[%s1530_s25 + $0x228] sm:$0xff]  ;;  %327 = vst [vmem:[%s1538_s26 + $0x108] sm:$0xff] %v326_v33 }
  0x23   : > { %329 = vst [vmem:[%s1538_s26 + $0x110] sm:$0xff] %v328_v34  ;;  %331 = vst [vmem:[%s1538_s26 + $0x118] sm:$0xff] %v330_v35  ;;  %v332_v36 = vld [vmem:[%s1530_s25 + $0x240] sm:$0xff]  ;;  %v334_v37 = vld [vmem:[%s1530_s25 + $0x248] sm:$0xff] }
  0x24   : > { %v336_v38 = vld [vmem:[%s1530_s25 + $0x260] sm:$0xff]  ;;  %333 = vst [vmem:[%s1538_s26 + $0x120] sm:$0xff] %v332_v36  ;;  %335 = vst [vmem:[%s1538_s26 + $0x128] sm:$0xff] %v334_v37  ;;  %v338_v39 = vld [vmem:[%s1530_s25 + $0x268] sm:$0xff] }
  0x25   : > { %337 = vst [vmem:[%s1538_s26 + $0x130] sm:$0xff] %v336_v38  ;;  %v340_v40 = vld [vmem:[%s1530_s25 + $0x280] sm:$0xff]  ;;  %v342_v41 = vld [vmem:[%s1530_s25 + $0x288] sm:$0xff]  ;;  %339 = vst [vmem:[%s1538_s26 + $0x138] sm:$0xff] %v338_v39 }
  0x26   : > { %341 = vst [vmem:[%s1538_s26 + $0x140] sm:$0xff] %v340_v40  ;;  %343 = vst [vmem:[%s1538_s26 + $0x148] sm:$0xff] %v342_v41  ;;  %v344_v42 = vld [vmem:[%s1530_s25 + $0x2a0] sm:$0xff]  ;;  %v346_v43 = vld [vmem:[%s1530_s25 + $0x2a8] sm:$0xff] }
  0x27   : > { %v348_v44 = vld [vmem:[%s1530_s25 + $0x2c0] sm:$0xff]  ;;  %345 = vst [vmem:[%s1538_s26 + $0x150] sm:$0xff] %v344_v42  ;;  %347 = vst [vmem:[%s1538_s26 + $0x158] sm:$0xff] %v346_v43  ;;  %v350_v45 = vld [vmem:[%s1530_s25 + $0x2c8] sm:$0xff] }
  0x28   : > { %349 = vst [vmem:[%s1538_s26 + $0x160] sm:$0xff] %v348_v44  ;;  %v352_v46 = vld [vmem:[%s1530_s25 + $0x2e0] sm:$0xff]  ;;  %v354_v47 = vld [vmem:[%s1530_s25 + $0x2e8] sm:$0xff]  ;;  %351 = vst [vmem:[%s1538_s26 + $0x168] sm:$0xff] %v350_v45 }
  0x29   : > { %353 = vst [vmem:[%s1538_s26 + $0x170] sm:$0xff] %v352_v46  ;;  %355 = vst [vmem:[%s1538_s26 + $0x178] sm:$0xff] %v354_v47 }
  0x2a PF: > { %p1348_p5 = scmp.ge.s32.totalorder %s1474_s14, 1  ;;  %p360_p6 = scmp.lt.s32.totalorder %s1474_s14, 3 }
  0x2c   : > { %p361_p7 = pnand %p1348_p5, %p360_p6 }
  0x2d   : > { %s1349_s27 = sshll.u32 (!%p361_p7), %s1341_s15, 1  ;;  %v401_v48 = vlaneseq (!%p361_p7)  ;;  %s367_s28 = sand.u32 (!%p361_p7), 1, %s1466_s12   ;;  %v399_v50 = vld [vmem:[%s1979_s2] sm:$0x3] (!%p361_p7) }
  0x2e   : > { %364 = sbr.rel (%p361_p7) target bundleno = 297 (0x129), region = 66  ;;  %p393_p8 = scmp.lt.s32.totalorder (!%p361_p7), %s1349_s27, 3  ;;  %v421_v54 = vld [vmem:[%s1978_s1] ss:$8 sm:$0x3] (!%p361_p7) }
  0x2f   : > { %s1427_s29 = smul.u32 (!%p361_p7), 384, %s367_s28  ;;  %v402_v49 = vshrl.u32 (!%p361_p7), %v401_v48, 7  ;;  %v1354_v4 = vld [vmem:[%s1978_s1 + $0x1] ss:$8 sm:$0x3] (!%p361_p7) }
  0x30   : > { %v1357_v23 = vld [vmem:[%s1978_s1 + $0x2] ss:$8 sm:$0x3] (!%p361_p7)  ;;  %v1360_v42 = vld [vmem:[%s1978_s1 + $0x3] ss:$8 sm:$0x3] (!%p361_p7) }
  0x31   : > { %v1638_v51 = vsub.s32 (!%p361_p7), 0, %v402_v49  ;;  %v1640_v52 = vsub.s32 (!%p361_p7), 1, %v402_v49  ;;  %s1642_s6 = scalar_lea.vmem (!%p361_p7), [#allocation2], %s1427_s29 }
  0x32   : > { %v416_v53 = vld [vmem:[%s1642_s6 + $0x8] sm:$0xff] (!%p361_p7)  ;;  %v415_v57 = vld [vmem:[%s1642_s6] sm:$0xff] (!%p361_p7)  ;;  %v1353_v9 = vld [vmem:[%s1642_s6 + $0x18] sm:$0xff] (!%p361_p7) }
  0x33   : > { %v404_v55 = vrot.slane (!%p361_p7), %v399_v50, %v1638_v51  ;;  %v408_v56 = vrot.slane (!%p361_p7), %v399_v50, %v1640_v52  ;;  %v419_v58 = vunpack.c.l.bf16 (!%p361_p7), %v416_v53  ;;  %v430_v59 = vrot.slane (!%p361_p7), %v421_v54, %v1638_v51  ;;  %v1352_v12 = vld [vmem:[%s1642_s6 + $0x10] sm:$0xff] (!%p361_p7)  ;;  %v1356_v28 = vld [vmem:[%s1642_s6 + $0x28] sm:$0xff] (!%p361_p7)  ;;  %v1355_v31 = vld [vmem:[%s1642_s6 + $0x20] sm:$0xff] (!%p361_p7) }
  0x34   : > { %v420_v60 = vunpack.c.h.bf16 (!%p361_p7), %v416_v53  ;;  %v434_v61 = vrot.slane (!%p361_p7), %v421_v54, %v1640_v52  ;;  %v417_v62 = vunpack.c.l.bf16 (!%p361_p7), %v415_v57  ;;  %v418_v63 = vunpack.c.h.bf16 (!%p361_p7), %v415_v57  ;;  %v1359_v47 = vld [vmem:[%s1642_s6 + $0x38] sm:$0xff] (!%p361_p7)  ;;  %v1358_v50 = vld [vmem:[%s1642_s6 + $0x30] sm:$0xff] (!%p361_p7) }
  0x35   : > { %s1985_s27 = smov (!%p393_p8, %s1349_s27), 3  ;;  %v439_v0 = vmul.f32 %v430_v59, %v419_v58  ;;  %v454_v13 = vunpack.c.l.bf16 %v1353_v9  ;;  %v466_v14 = vrot.slane %v1354_v4, %v1638_v51  ;;  %v455_v15 = vunpack.c.h.bf16 %v1353_v9 }
  0x36   : > { %s1425_s5 = sshll.u32 %s1985_s27, 4  ;;  %v440_v1 = vmul.f32 %v434_v61, %v420_v60  ;;  %v437_v2 = vmul.f32 %v430_v59, %v417_v62  ;;  %v438_v3 = vmul.f32 %v434_v61, %v418_v63  ;;  %v470_v16 = vrot.slane %v1354_v4, %v1640_v52  ;;  %v1362_v63 = vld [vmem:[%s1642_s6 + $0x48] sm:$0xff] }
  0x37   : > { %s1651_s11 = scalar_lea.vmem %s1980_s3, %s1425_s5  ;;  %v443_v6 = vadd.f32 %v439_v0, %v404_v55  ;;  %v452_v17 = vunpack.c.l.bf16 %v1352_v12  ;;  %v453_v18 = vunpack.c.h.bf16 %v1352_v12  ;;  %v475_v19 = vmul.f32 %v466_v14, %v454_v13  ;;  %v1363_v4 = vld [vmem:[%s1978_s1 + $0x4] ss:$8 sm:$0x3] }
  0x38   : > { %411 = vst [vmem:[%s1651_s11] sm:$0xff] %v404_v55  ;;  %412 = vst [vmem:[%s1651_s11 + $0x8] sm:$0xff] %v408_v56  ;;  %v444_v8 = vadd.f32 %v440_v1, %v408_v56  ;;  %v476_v20 = vmul.f32 %v470_v16, %v455_v15  ;;  %v490_v32 = vunpack.c.l.bf16 %v1356_v28  ;;  %v502_v33 = vrot.slane %v1357_v23, %v1638_v51 }
  0x39   : > { %413 = vst [vmem:[%s1651_s11 + $0x10] sm:$0xff] %v404_v55  ;;  %414 = vst [vmem:[%s1651_s11 + $0x18] sm:$0xff] %v408_v56  ;;  %v473_v21 = vmul.f32 %v466_v14, %v452_v17  ;;  %v474_v22 = vmul.f32 %v470_v16, %v453_v18  ;;  %v479_v25 = vadd.f32 %v475_v19, %v443_v6  ;;  %v491_v34 = vunpack.c.h.bf16 %v1356_v28  ;;  %v1365_v18 = vld [vmem:[%s1642_s6 + $0x58] sm:$0xff] }
  0x3a   : > { %447 = vst [vmem:[%s1651_s11 + $0x10] sm:$0xff] %v443_v6  ;;  %448 = vst [vmem:[%s1651_s11 + $0x18] sm:$0xff] %v444_v8  ;;  %v480_v27 = vadd.f32 %v476_v20, %v444_v8  ;;  %v506_v35 = vrot.slane %v1357_v23, %v1640_v52  ;;  %v488_v36 = vunpack.c.l.bf16 %v1355_v31  ;;  %v489_v37 = vunpack.c.h.bf16 %v1355_v31  ;;  %v1366_v23 = vld [vmem:[%s1978_s1 + $0x5] ss:$8 sm:$0x3] }
  0x3b   : > { %483 = vst [vmem:[%s1651_s11 + $0x10] sm:$0xff] %v479_v25  ;;  %v511_v38 = vmul.f32 %v502_v33, %v490_v32  ;;  %v526_v53 = vunpack.c.l.bf16 %v1359_v47  ;;  %v538_v54 = vrot.slane %v1360_v42, %v1638_v51  ;;  %v527_v55 = vunpack.c.h.bf16 %v1359_v47 }
  0x3c   : > { %484 = vst [vmem:[%s1651_s11 + $0x18] sm:$0xff] %v480_v27  ;;  %v512_v39 = vmul.f32 %v506_v35, %v491_v34  ;;  %v509_v40 = vmul.f32 %v502_v33, %v488_v36  ;;  %v510_v41 = vmul.f32 %v506_v35, %v489_v37  ;;  %v542_v56 = vrot.slane %v1360_v42, %v1640_v52  ;;  %v1368_v37 = vld [vmem:[%s1642_s6 + $0x68] sm:$0xff] }
  0x3d   : > { %v515_v44 = vadd.f32 %v511_v38, %v479_v25  ;;  %v524_v57 = vunpack.c.l.bf16 %v1358_v50  ;;  %v525_v58 = vunpack.c.h.bf16 %v1358_v50  ;;  %v547_v59 = vmul.f32 %v538_v54, %v526_v53  ;;  %v1369_v42 = vld [vmem:[%s1978_s1 + $0x6] ss:$8 sm:$0x3] }
  0x3e   : > { %v516_v46 = vadd.f32 %v512_v39, %v480_v27  ;;  %v548_v60 = vmul.f32 %v542_v56, %v527_v55  ;;  %v562_v8 = vunpack.c.l.bf16 %v1362_v63  ;;  %v574_v9 = vrot.slane %v1363_v4, %v1638_v51 }
  0x3f   : > { %v422_v5 = vld [vmem:[%s1651_s11] sm:$0xff]  ;;  %v423_v7 = vld [vmem:[%s1651_s11 + $0x8] sm:$0xff]  ;;  %519 = vst [vmem:[%s1651_s11 + $0x10] sm:$0xff] %v515_v44  ;;  %v545_v61 = vmul.f32 %v538_v54, %v524_v57  ;;  %v546_v62 = vmul.f32 %v542_v56, %v525_v58  ;;  %v551_v1 = vadd.f32 %v547_v59, %v515_v44  ;;  %v598_v27 = vunpack.c.l.bf16 %v1365_v18  ;;  %v1371_v58 = vld [vmem:[%s1642_s6 + $0x78] sm:$0xff] }
  0x40   : > { %v441_v10 = vadd.f32 %v437_v2, %v422_v5  ;;  %v442_v11 = vadd.f32 %v438_v3, %v423_v7  ;;  %520 = vst [vmem:[%s1651_s11 + $0x18] sm:$0xff] %v516_v46  ;;  %v552_v3 = vadd.f32 %v548_v60, %v516_v46  ;;  %v1361_v7 = vld [vmem:[%s1642_s6 + $0x40] sm:$0xff]  ;;  %v583_v14 = vmul.f32 %v574_v9, %v562_v8 }
  0x41   : > { %555 = vst [vmem:[%s1651_s11 + $0x10] sm:$0xff] %v551_v1  ;;  %v560_v12 = vunpack.c.l.bf16 %v1361_v7  ;;  %v561_v13 = vunpack.c.h.bf16 %v1361_v7  ;;  %v610_v28 = vrot.slane %v1366_v23, %v1638_v51  ;;  %v634_v46 = vunpack.c.l.bf16 %v1368_v37 }
  0x42   : > { %445 = vst [vmem:[%s1651_s11] sm:$0xff] %v441_v10  ;;  %446 = vst [vmem:[%s1651_s11 + $0x8] sm:$0xff] %v442_v11  ;;  %v563_v10 = vunpack.c.h.bf16 %v1362_v63  ;;  %v578_v11 = vrot.slane %v1363_v4, %v1640_v52  ;;  %v587_v20 = vadd.f32 %v583_v14, %v551_v1  ;;  %v646_v47 = vrot.slane %v1369_v42, %v1638_v51  ;;  %v1372_v63 = vld [vmem:[%s1978_s1 + $0x7] ss:$8 sm:$0x3] }
  0x43   : > { %556 = vst [vmem:[%s1651_s11 + $0x18] sm:$0xff] %v552_v3  ;;  %v581_v16 = vmul.f32 %v574_v9, %v560_v12  ;;  %v619_v33 = vmul.f32 %v610_v28, %v598_v27  ;;  %v682_v4 = vrot.slane %v1372_v63, %v1638_v51 }
  0x44   : > { %v584_v15 = vmul.f32 %v578_v11, %v563_v10  ;;  %v582_v17 = vmul.f32 %v578_v11, %v561_v13  ;;  %591 = vst [vmem:[%s1651_s11 + $0x10] sm:$0xff] %v587_v20  ;;  %v655_v54 = vmul.f32 %v646_v47, %v634_v46  ;;  %v1374_v13 = vld [vmem:[%s1642_s6 + $0x88] sm:$0xff] }
  0x45   : > { %v623_v39 = vadd.f32 %v619_v33, %v587_v20 }
  0x47   : > { %627 = vst [vmem:[%s1651_s11 + $0x10] sm:$0xff] %v623_v39  ;;  %v659_v60 = vadd.f32 %v655_v54, %v623_v39 }
  0x49   : > { %v458_v24 = vld [vmem:[%s1651_s11] sm:$0xff]  ;;  %v459_v26 = vld [vmem:[%s1651_s11 + $0x8] sm:$0xff]  ;;  %663 = vst [vmem:[%s1651_s11 + $0x10] sm:$0xff] %v659_v60 }
  0x4a   : > { %v477_v29 = vadd.f32 %v473_v21, %v458_v24  ;;  %v478_v30 = vadd.f32 %v474_v22, %v459_v26  ;;  %v588_v22 = vadd.f32 %v584_v15, %v552_v3  ;;  %v1364_v26 = vld [vmem:[%s1642_s6 + $0x50] sm:$0xff]  ;;  %v670_v3 = vunpack.c.l.bf16 %v1371_v58 }
  0x4b   : > { %v596_v31 = vunpack.c.l.bf16 %v1364_v26  ;;  %v597_v32 = vunpack.c.h.bf16 %v1364_v26 }
  0x4c   : > { %481 = vst [vmem:[%s1651_s11] sm:$0xff] %v477_v29  ;;  %482 = vst [vmem:[%s1651_s11 + $0x8] sm:$0xff] %v478_v30  ;;  %v599_v29 = vunpack.c.h.bf16 %v1365_v18  ;;  %v614_v30 = vrot.slane %v1366_v23, %v1640_v52  ;;  %v691_v9 = vmul.f32 %v682_v4, %v670_v3  ;;  %v1375_v18 = vld [vmem:[%s1978_s1 + $0x10] ss:$8 sm:$0x3] }
  0x4d   : > { %592 = vst [vmem:[%s1651_s11 + $0x18] sm:$0xff] %v588_v22  ;;  %v617_v35 = vmul.f32 %v610_v28, %v596_v31  ;;  %v718_v23 = vrot.slane %v1375_v18, %v1638_v51 }
  0x4e   : > { %v620_v34 = vmul.f32 %v614_v30, %v599_v29  ;;  %v618_v36 = vmul.f32 %v614_v30, %v597_v32  ;;  %v695_v15 = vadd.f32 %v691_v9, %v659_v60  ;;  %v1377_v32 = vld [vmem:[%s1642_s6 + $0x98] sm:$0xff] }
  0x50   : > { %699 = vst [vmem:[%s1651_s11 + $0x10] sm:$0xff] %v695_v15 }
  0x53   : > { %v494_v43 = vld [vmem:[%s1651_s11] sm:$0xff]  ;;  %v495_v45 = vld [vmem:[%s1651_s11 + $0x8] sm:$0xff] }
  0x54   : > { %v513_v48 = vadd.f32 %v509_v40, %v494_v43  ;;  %v514_v49 = vadd.f32 %v510_v41, %v495_v45  ;;  %v624_v41 = vadd.f32 %v620_v34, %v588_v22  ;;  %v1367_v45 = vld [vmem:[%s1642_s6 + $0x60] sm:$0xff]  ;;  %v706_v22 = vunpack.c.l.bf16 %v1374_v13 }
  0x55   : > { %v632_v50 = vunpack.c.l.bf16 %v1367_v45  ;;  %v633_v53 = vunpack.c.h.bf16 %v1367_v45 }
  0x56   : > { %517 = vst [vmem:[%s1651_s11] sm:$0xff] %v513_v48  ;;  %518 = vst [vmem:[%s1651_s11 + $0x8] sm:$0xff] %v514_v49  ;;  %v635_v48 = vunpack.c.h.bf16 %v1368_v37  ;;  %v650_v49 = vrot.slane %v1369_v42, %v1640_v52  ;;  %v727_v28 = vmul.f32 %v718_v23, %v706_v22  ;;  %v1378_v37 = vld [vmem:[%s1978_s1 + $0x11] ss:$8 sm:$0x3] }
  0x57   : > { %628 = vst [vmem:[%s1651_s11 + $0x18] sm:$0xff] %v624_v41  ;;  %v653_v56 = vmul.f32 %v646_v47, %v632_v50  ;;  %v754_v42 = vrot.slane %v1378_v37, %v1638_v51 }
  0x58   : > { %v656_v55 = vmul.f32 %v650_v49, %v635_v48  ;;  %v654_v57 = vmul.f32 %v650_v49, %v633_v53  ;;  %v731_v34 = vadd.f32 %v727_v28, %v695_v15  ;;  %v1380_v53 = vld [vmem:[%s1642_s6 + $0xa8] sm:$0xff] }
  0x5a   : > { %735 = vst [vmem:[%s1651_s11 + $0x10] sm:$0xff] %v731_v34 }
  0x5d   : > { %v530_v0 = vld [vmem:[%s1651_s11] sm:$0xff]  ;;  %v531_v2 = vld [vmem:[%s1651_s11 + $0x8] sm:$0xff] }
  0x5e   : > { %v549_v5 = vadd.f32 %v545_v61, %v530_v0  ;;  %v550_v6 = vadd.f32 %v546_v62, %v531_v2  ;;  %v660_v62 = vadd.f32 %v656_v55, %v624_v41  ;;  %v1370_v2 = vld [vmem:[%s1642_s6 + $0x70] sm:$0xff]  ;;  %v742_v41 = vunpack.c.l.bf16 %v1377_v32 }
  0x5f   : > { %v668_v7 = vunpack.c.l.bf16 %v1370_v2  ;;  %v669_v8 = vunpack.c.h.bf16 %v1370_v2 }
  0x60   : > { %553 = vst [vmem:[%s1651_s11] sm:$0xff] %v549_v5  ;;  %554 = vst [vmem:[%s1651_s11 + $0x8] sm:$0xff] %v550_v6  ;;  %v671_v5 = vunpack.c.h.bf16 %v1371_v58  ;;  %v686_v6 = vrot.slane %v1372_v63, %v1640_v52  ;;  %v763_v47 = vmul.f32 %v754_v42, %v742_v41  ;;  %v1381_v58 = vld [vmem:[%s1978_s1 + $0x12] ss:$8 sm:$0x3] }
  0x61   : > { %664 = vst [vmem:[%s1651_s11 + $0x18] sm:$0xff] %v660_v62  ;;  %v689_v11 = vmul.f32 %v682_v4, %v668_v7  ;;  %v790_v63 = vrot.slane %v1381_v58, %v1638_v51 }
  0x62   : > { %v692_v10 = vmul.f32 %v686_v6, %v671_v5  ;;  %v690_v12 = vmul.f32 %v686_v6, %v669_v8  ;;  %v767_v55 = vadd.f32 %v763_v47, %v731_v34  ;;  %v1383_v8 = vld [vmem:[%s1642_s6 + $0xb8] sm:$0xff] }
  0x64   : > { %771 = vst [vmem:[%s1651_s11 + $0x10] sm:$0xff] %v767_v55 }
  0x67   : > { %v566_v19 = vld [vmem:[%s1651_s11] sm:$0xff]  ;;  %v567_v21 = vld [vmem:[%s1651_s11 + $0x8] sm:$0xff] }
  0x68   : > { %v585_v24 = vadd.f32 %v581_v16, %v566_v19  ;;  %v586_v25 = vadd.f32 %v582_v17, %v567_v21  ;;  %v696_v17 = vadd.f32 %v692_v10, %v660_v62  ;;  %v1373_v21 = vld [vmem:[%s1642_s6 + $0x80] sm:$0xff]  ;;  %v778_v62 = vunpack.c.l.bf16 %v1380_v53 }
  0x69   : > { %v704_v26 = vunpack.c.l.bf16 %v1373_v21  ;;  %v705_v27 = vunpack.c.h.bf16 %v1373_v21 }
  0x6a   : > { %589 = vst [vmem:[%s1651_s11] sm:$0xff] %v585_v24  ;;  %590 = vst [vmem:[%s1651_s11 + $0x8] sm:$0xff] %v586_v25  ;;  %v707_v24 = vunpack.c.h.bf16 %v1374_v13  ;;  %v722_v25 = vrot.slane %v1375_v18, %v1640_v52  ;;  %v799_v4 = vmul.f32 %v790_v63, %v778_v62  ;;  %v1384_v13 = vld [vmem:[%s1978_s1 + $0x13] ss:$8 sm:$0x3] }
  0x6b   : > { %700 = vst [vmem:[%s1651_s11 + $0x18] sm:$0xff] %v696_v17  ;;  %v725_v30 = vmul.f32 %v718_v23, %v704_v26  ;;  %v826_v18 = vrot.slane %v1384_v13, %v1638_v51 }
  0x6c   : > { %v728_v29 = vmul.f32 %v722_v25, %v707_v24  ;;  %v726_v31 = vmul.f32 %v722_v25, %v705_v27  ;;  %v803_v10 = vadd.f32 %v799_v4, %v767_v55  ;;  %v1386_v27 = vld [vmem:[%s1642_s6 + $0xc8] sm:$0xff] }
  0x6e   : > { %807 = vst [vmem:[%s1651_s11 + $0x10] sm:$0xff] %v803_v10 }
  0x71   : > { %v602_v38 = vld [vmem:[%s1651_s11] sm:$0xff]  ;;  %v603_v40 = vld [vmem:[%s1651_s11 + $0x8] sm:$0xff] }
  0x72   : > { %v621_v43 = vadd.f32 %v617_v35, %v602_v38  ;;  %v622_v44 = vadd.f32 %v618_v36, %v603_v40  ;;  %v732_v36 = vadd.f32 %v728_v29, %v696_v17  ;;  %v1376_v40 = vld [vmem:[%s1642_s6 + $0x90] sm:$0xff]  ;;  %v814_v17 = vunpack.c.l.bf16 %v1383_v8 }
  0x73   : > { %v740_v45 = vunpack.c.l.bf16 %v1376_v40  ;;  %v741_v46 = vunpack.c.h.bf16 %v1376_v40 }
  0x74   : > { %625 = vst [vmem:[%s1651_s11] sm:$0xff] %v621_v43  ;;  %626 = vst [vmem:[%s1651_s11 + $0x8] sm:$0xff] %v622_v44  ;;  %v743_v43 = vunpack.c.h.bf16 %v1377_v32  ;;  %v758_v44 = vrot.slane %v1378_v37, %v1640_v52  ;;  %v835_v23 = vmul.f32 %v826_v18, %v814_v17  ;;  %v1387_v32 = vld [vmem:[%s1978_s1 + $0x14] ss:$8 sm:$0x3] }
  0x75   : > { %736 = vst [vmem:[%s1651_s11 + $0x18] sm:$0xff] %v732_v36  ;;  %v761_v49 = vmul.f32 %v754_v42, %v740_v45  ;;  %v862_v37 = vrot.slane %v1387_v32, %v1638_v51 }
  0x76   : > { %v764_v48 = vmul.f32 %v758_v44, %v743_v43  ;;  %v762_v50 = vmul.f32 %v758_v44, %v741_v46  ;;  %v839_v29 = vadd.f32 %v835_v23, %v803_v10  ;;  %v1389_v46 = vld [vmem:[%s1642_s6 + $0xd8] sm:$0xff] }
  0x78   : > { %843 = vst [vmem:[%s1651_s11 + $0x10] sm:$0xff] %v839_v29 }
  0x7b   : > { %v638_v59 = vld [vmem:[%s1651_s11] sm:$0xff]  ;;  %v639_v61 = vld [vmem:[%s1651_s11 + $0x8] sm:$0xff] }
  0x7c   : > { %v657_v0 = vadd.f32 %v653_v56, %v638_v59  ;;  %v658_v1 = vadd.f32 %v654_v57, %v639_v61  ;;  %v768_v57 = vadd.f32 %v764_v48, %v732_v36  ;;  %v1379_v61 = vld [vmem:[%s1642_s6 + $0xa0] sm:$0xff]  ;;  %v850_v36 = vunpack.c.l.bf16 %v1386_v27 }
  0x7d   : > { %v776_v2 = vunpack.c.l.bf16 %v1379_v61  ;;  %v777_v3 = vunpack.c.h.bf16 %v1379_v61 }
  0x7e   : > { %661 = vst [vmem:[%s1651_s11] sm:$0xff] %v657_v0  ;;  %662 = vst [vmem:[%s1651_s11 + $0x8] sm:$0xff] %v658_v1  ;;  %v779_v0 = vunpack.c.h.bf16 %v1380_v53  ;;  %v794_v1 = vrot.slane %v1381_v58, %v1640_v52  ;;  %v871_v42 = vmul.f32 %v862_v37, %v850_v36  ;;  %v1390_v53 = vld [vmem:[%s1978_s1 + $0x15] ss:$8 sm:$0x3] }
  0x7f   : > { %772 = vst [vmem:[%s1651_s11 + $0x18] sm:$0xff] %v768_v57  ;;  %v797_v6 = vmul.f32 %v790_v63, %v776_v2  ;;  %v898_v58 = vrot.slane %v1390_v53, %v1638_v51 }
  0x80   : > { %v800_v5 = vmul.f32 %v794_v1, %v779_v0  ;;  %v798_v7 = vmul.f32 %v794_v1, %v777_v3  ;;  %v875_v48 = vadd.f32 %v871_v42, %v839_v29  ;;  %v1392_v3 = vld [vmem:[%s1642_s6 + $0xe8] sm:$0xff] }
  0x82   : > { %879 = vst [vmem:[%s1651_s11 + $0x10] sm:$0xff] %v875_v48 }
  0x85   : > { %v674_v14 = vld [vmem:[%s1651_s11] sm:$0xff]  ;;  %v675_v16 = vld [vmem:[%s1651_s11 + $0x8] sm:$0xff] }
  0x86   : > { %v693_v19 = vadd.f32 %v689_v11, %v674_v14  ;;  %v694_v20 = vadd.f32 %v690_v12, %v675_v16  ;;  %v804_v12 = vadd.f32 %v800_v5, %v768_v57  ;;  %v1382_v16 = vld [vmem:[%s1642_s6 + $0xb0] sm:$0xff]  ;;  %v886_v57 = vunpack.c.l.bf16 %v1389_v46 }
  0x87   : > { %v812_v21 = vunpack.c.l.bf16 %v1382_v16  ;;  %v813_v22 = vunpack.c.h.bf16 %v1382_v16 }
  0x88   : > { %697 = vst [vmem:[%s1651_s11] sm:$0xff] %v693_v19  ;;  %698 = vst [vmem:[%s1651_s11 + $0x8] sm:$0xff] %v694_v20  ;;  %v815_v19 = vunpack.c.h.bf16 %v1383_v8  ;;  %v830_v20 = vrot.slane %v1384_v13, %v1640_v52  ;;  %v907_v63 = vmul.f32 %v898_v58, %v886_v57  ;;  %v1393_v8 = vld [vmem:[%s1978_s1 + $0x16] ss:$8 sm:$0x3] }
  0x89   : > { %808 = vst [vmem:[%s1651_s11 + $0x18] sm:$0xff] %v804_v12  ;;  %v833_v25 = vmul.f32 %v826_v18, %v812_v21  ;;  %v934_v13 = vrot.slane %v1393_v8, %v1638_v51 }
  0x8a   : > { %v836_v24 = vmul.f32 %v830_v20, %v815_v19  ;;  %v834_v26 = vmul.f32 %v830_v20, %v813_v22  ;;  %v911_v5 = vadd.f32 %v907_v63, %v875_v48  ;;  %v1395_v22 = vld [vmem:[%s1642_s6 + $0xf8] sm:$0xff] }
  0x8c   : > { %915 = vst [vmem:[%s1651_s11 + $0x10] sm:$0xff] %v911_v5 }
  0x8f   : > { %v710_v33 = vld [vmem:[%s1651_s11] sm:$0xff]  ;;  %v711_v35 = vld [vmem:[%s1651_s11 + $0x8] sm:$0xff] }
  0x90   : > { %v729_v38 = vadd.f32 %v725_v30, %v710_v33  ;;  %v730_v39 = vadd.f32 %v726_v31, %v711_v35  ;;  %v840_v31 = vadd.f32 %v836_v24, %v804_v12  ;;  %v1385_v35 = vld [vmem:[%s1642_s6 + $0xc0] sm:$0xff]  ;;  %v922_v12 = vunpack.c.l.bf16 %v1392_v3 }
  0x91   : > { %v848_v40 = vunpack.c.l.bf16 %v1385_v35  ;;  %v849_v41 = vunpack.c.h.bf16 %v1385_v35 }
  0x92   : > { %733 = vst [vmem:[%s1651_s11] sm:$0xff] %v729_v38  ;;  %734 = vst [vmem:[%s1651_s11 + $0x8] sm:$0xff] %v730_v39  ;;  %v851_v38 = vunpack.c.h.bf16 %v1386_v27  ;;  %v866_v39 = vrot.slane %v1387_v32, %v1640_v52  ;;  %v943_v18 = vmul.f32 %v934_v13, %v922_v12  ;;  %v1396_v27 = vld [vmem:[%s1978_s1 + $0x17] ss:$8 sm:$0x3] }
  0x93   : > { %844 = vst [vmem:[%s1651_s11 + $0x18] sm:$0xff] %v840_v31  ;;  %v869_v44 = vmul.f32 %v862_v37, %v848_v40  ;;  %v970_v32 = vrot.slane %v1396_v27, %v1638_v51 }
  0x94   : > { %v872_v43 = vmul.f32 %v866_v39, %v851_v38  ;;  %v870_v45 = vmul.f32 %v866_v39, %v849_v41  ;;  %v947_v24 = vadd.f32 %v943_v18, %v911_v5  ;;  %v1398_v41 = vld [vmem:[%s1642_s6 + $0x108] sm:$0xff] }
  0x96   : > { %951 = vst [vmem:[%s1651_s11 + $0x10] sm:$0xff] %v947_v24 }
  0x99   : > { %v746_v54 = vld [vmem:[%s1651_s11] sm:$0xff]  ;;  %v747_v56 = vld [vmem:[%s1651_s11 + $0x8] sm:$0xff] }
  0x9a   : > { %v765_v59 = vadd.f32 %v761_v49, %v746_v54  ;;  %v766_v60 = vadd.f32 %v762_v50, %v747_v56  ;;  %v876_v50 = vadd.f32 %v872_v43, %v840_v31  ;;  %v1388_v56 = vld [vmem:[%s1642_s6 + $0xd0] sm:$0xff]  ;;  %v958_v31 = vunpack.c.l.bf16 %v1395_v22 }
  0x9b   : > { %v884_v61 = vunpack.c.l.bf16 %v1388_v56  ;;  %v885_v62 = vunpack.c.h.bf16 %v1388_v56 }
  0x9c   : > { %769 = vst [vmem:[%s1651_s11] sm:$0xff] %v765_v59  ;;  %770 = vst [vmem:[%s1651_s11 + $0x8] sm:$0xff] %v766_v60  ;;  %v887_v59 = vunpack.c.h.bf16 %v1389_v46  ;;  %v902_v60 = vrot.slane %v1390_v53, %v1640_v52  ;;  %v979_v37 = vmul.f32 %v970_v32, %v958_v31  ;;  %v1399_v46 = vld [vmem:[%s1978_s1 + $0x20] ss:$8 sm:$0x3] }
  0x9d   : > { %880 = vst [vmem:[%s1651_s11 + $0x18] sm:$0xff] %v876_v50  ;;  %v905_v1 = vmul.f32 %v898_v58, %v884_v61  ;;  %v1006_v53 = vrot.slane %v1399_v46, %v1638_v51 }
  0x9e   : > { %v908_v0 = vmul.f32 %v902_v60, %v887_v59  ;;  %v906_v2 = vmul.f32 %v902_v60, %v885_v62  ;;  %v983_v43 = vadd.f32 %v979_v37, %v947_v24  ;;  %v1401_v62 = vld [vmem:[%s1642_s6 + $0x118] sm:$0xff] }
  0xa0   : > { %987 = vst [vmem:[%s1651_s11 + $0x10] sm:$0xff] %v983_v43 }
  0xa3   : > { %v782_v9 = vld [vmem:[%s1651_s11] sm:$0xff]  ;;  %v783_v11 = vld [vmem:[%s1651_s11 + $0x8] sm:$0xff] }
  0xa4   : > { %v801_v14 = vadd.f32 %v797_v6, %v782_v9  ;;  %v802_v15 = vadd.f32 %v798_v7, %v783_v11  ;;  %v912_v7 = vadd.f32 %v908_v0, %v876_v50  ;;  %v1391_v11 = vld [vmem:[%s1642_s6 + $0xe0] sm:$0xff]  ;;  %v994_v50 = vunpack.c.l.bf16 %v1398_v41 }
  0xa5   : > { %v920_v16 = vunpack.c.l.bf16 %v1391_v11  ;;  %v921_v17 = vunpack.c.h.bf16 %v1391_v11 }
  0xa6   : > { %805 = vst [vmem:[%s1651_s11] sm:$0xff] %v801_v14  ;;  %806 = vst [vmem:[%s1651_s11 + $0x8] sm:$0xff] %v802_v15  ;;  %v923_v14 = vunpack.c.h.bf16 %v1392_v3  ;;  %v938_v15 = vrot.slane %v1393_v8, %v1640_v52  ;;  %v1015_v58 = vmul.f32 %v1006_v53, %v994_v50  ;;  %v1402_v3 = vld [vmem:[%s1978_s1 + $0x21] ss:$8 sm:$0x3] }
  0xa7   : > { %916 = vst [vmem:[%s1651_s11 + $0x18] sm:$0xff] %v912_v7  ;;  %v941_v20 = vmul.f32 %v934_v13, %v920_v16  ;;  %v1042_v8 = vrot.slane %v1402_v3, %v1638_v51 }
  0xa8   : > { %v944_v19 = vmul.f32 %v938_v15, %v923_v14  ;;  %v942_v21 = vmul.f32 %v938_v15, %v921_v17  ;;  %v1019_v0 = vadd.f32 %v1015_v58, %v983_v43  ;;  %v1404_v17 = vld [vmem:[%s1642_s6 + $0x128] sm:$0xff] }
  0xaa   : > { %1023 = vst [vmem:[%s1651_s11 + $0x10] sm:$0xff] %v1019_v0 }
  0xad   : > { %v818_v28 = vld [vmem:[%s1651_s11] sm:$0xff]  ;;  %v819_v30 = vld [vmem:[%s1651_s11 + $0x8] sm:$0xff] }
  0xae   : > { %v837_v33 = vadd.f32 %v833_v25, %v818_v28  ;;  %v838_v34 = vadd.f32 %v834_v26, %v819_v30  ;;  %v948_v26 = vadd.f32 %v944_v19, %v912_v7  ;;  %v1394_v30 = vld [vmem:[%s1642_s6 + $0xf0] sm:$0xff]  ;;  %v1030_v7 = vunpack.c.l.bf16 %v1401_v62 }
  0xaf   : > { %v956_v35 = vunpack.c.l.bf16 %v1394_v30  ;;  %v957_v36 = vunpack.c.h.bf16 %v1394_v30 }
  0xb0   : > { %841 = vst [vmem:[%s1651_s11] sm:$0xff] %v837_v33  ;;  %842 = vst [vmem:[%s1651_s11 + $0x8] sm:$0xff] %v838_v34  ;;  %v959_v33 = vunpack.c.h.bf16 %v1395_v22  ;;  %v974_v34 = vrot.slane %v1396_v27, %v1640_v52  ;;  %v1051_v13 = vmul.f32 %v1042_v8, %v1030_v7  ;;  %v1405_v22 = vld [vmem:[%s1978_s1 + $0x22] ss:$8 sm:$0x3] }
  0xb1   : > { %952 = vst [vmem:[%s1651_s11 + $0x18] sm:$0xff] %v948_v26  ;;  %v977_v39 = vmul.f32 %v970_v32, %v956_v35  ;;  %v1078_v27 = vrot.slane %v1405_v22, %v1638_v51 }
  0xb2   : > { %v980_v38 = vmul.f32 %v974_v34, %v959_v33  ;;  %v978_v40 = vmul.f32 %v974_v34, %v957_v36  ;;  %v1055_v19 = vadd.f32 %v1051_v13, %v1019_v0  ;;  %v1407_v36 = vld [vmem:[%s1642_s6 + $0x138] sm:$0xff] }
  0xb4   : > { %1059 = vst [vmem:[%s1651_s11 + $0x10] sm:$0xff] %v1055_v19 }
  0xb7   : > { %v854_v47 = vld [vmem:[%s1651_s11] sm:$0xff]  ;;  %v855_v49 = vld [vmem:[%s1651_s11 + $0x8] sm:$0xff] }
  0xb8   : > { %v873_v54 = vadd.f32 %v869_v44, %v854_v47  ;;  %v874_v55 = vadd.f32 %v870_v45, %v855_v49  ;;  %v984_v45 = vadd.f32 %v980_v38, %v948_v26  ;;  %v1397_v49 = vld [vmem:[%s1642_s6 + $0x100] sm:$0xff]  ;;  %v1066_v26 = vunpack.c.l.bf16 %v1404_v17 }
  0xb9   : > { %v992_v56 = vunpack.c.l.bf16 %v1397_v49  ;;  %v993_v57 = vunpack.c.h.bf16 %v1397_v49 }
  0xba   : > { %877 = vst [vmem:[%s1651_s11] sm:$0xff] %v873_v54  ;;  %878 = vst [vmem:[%s1651_s11 + $0x8] sm:$0xff] %v874_v55  ;;  %v995_v54 = vunpack.c.h.bf16 %v1398_v41  ;;  %v1010_v55 = vrot.slane %v1399_v46, %v1640_v52  ;;  %v1087_v32 = vmul.f32 %v1078_v27, %v1066_v26  ;;  %v1408_v41 = vld [vmem:[%s1978_s1 + $0x23] ss:$8 sm:$0x3] }
  0xbb   : > { %988 = vst [vmem:[%s1651_s11 + $0x18] sm:$0xff] %v984_v45  ;;  %v1013_v60 = vmul.f32 %v1006_v53, %v992_v56  ;;  %v1114_v46 = vrot.slane %v1408_v41, %v1638_v51 }
  0xbc   : > { %v1016_v59 = vmul.f32 %v1010_v55, %v995_v54  ;;  %v1014_v61 = vmul.f32 %v1010_v55, %v993_v57  ;;  %v1091_v38 = vadd.f32 %v1087_v32, %v1055_v19  ;;  %v1410_v57 = vld [vmem:[%s1642_s6 + $0x148] sm:$0xff] }
  0xbe   : > { %1095 = vst [vmem:[%s1651_s11 + $0x10] sm:$0xff] %v1091_v38 }
  0xc1   : > { %v890_v4 = vld [vmem:[%s1651_s11] sm:$0xff]  ;;  %v891_v6 = vld [vmem:[%s1651_s11 + $0x8] sm:$0xff] }
  0xc2   : > { %v909_v9 = vadd.f32 %v905_v1, %v890_v4  ;;  %v910_v10 = vadd.f32 %v906_v2, %v891_v6  ;;  %v1020_v2 = vadd.f32 %v1016_v59, %v984_v45  ;;  %v1400_v6 = vld [vmem:[%s1642_s6 + $0x110] sm:$0xff]  ;;  %v1102_v45 = vunpack.c.l.bf16 %v1407_v36 }
  0xc3   : > { %v1028_v11 = vunpack.c.l.bf16 %v1400_v6  ;;  %v1029_v12 = vunpack.c.h.bf16 %v1400_v6 }
  0xc4   : > { %913 = vst [vmem:[%s1651_s11] sm:$0xff] %v909_v9  ;;  %914 = vst [vmem:[%s1651_s11 + $0x8] sm:$0xff] %v910_v10  ;;  %v1031_v9 = vunpack.c.h.bf16 %v1401_v62  ;;  %v1046_v10 = vrot.slane %v1402_v3, %v1640_v52  ;;  %v1123_v53 = vmul.f32 %v1114_v46, %v1102_v45  ;;  %v1411_v62 = vld [vmem:[%s1978_s1 + $0x24] ss:$8 sm:$0x3] }
  0xc5   : > { %1024 = vst [vmem:[%s1651_s11 + $0x18] sm:$0xff] %v1020_v2  ;;  %v1049_v15 = vmul.f32 %v1042_v8, %v1028_v11  ;;  %v1150_v3 = vrot.slane %v1411_v62, %v1638_v51 }
  0xc6   : > { %v1052_v14 = vmul.f32 %v1046_v10, %v1031_v9  ;;  %v1050_v16 = vmul.f32 %v1046_v10, %v1029_v12  ;;  %v1127_v59 = vadd.f32 %v1123_v53, %v1091_v38  ;;  %v1413_v12 = vld [vmem:[%s1642_s6 + $0x158] sm:$0xff] }
  0xc8   : > { %1131 = vst [vmem:[%s1651_s11 + $0x10] sm:$0xff] %v1127_v59 }
  0xcb   : > { %v926_v23 = vld [vmem:[%s1651_s11] sm:$0xff]  ;;  %v927_v25 = vld [vmem:[%s1651_s11 + $0x8] sm:$0xff] }
  0xcc   : > { %v945_v28 = vadd.f32 %v941_v20, %v926_v23  ;;  %v946_v29 = vadd.f32 %v942_v21, %v927_v25  ;;  %v1056_v21 = vadd.f32 %v1052_v14, %v1020_v2  ;;  %v1403_v25 = vld [vmem:[%s1642_s6 + $0x120] sm:$0xff]  ;;  %v1138_v2 = vunpack.c.l.bf16 %v1410_v57 }
  0xcd   : > { %v1064_v30 = vunpack.c.l.bf16 %v1403_v25  ;;  %v1065_v31 = vunpack.c.h.bf16 %v1403_v25 }
  0xce   : > { %949 = vst [vmem:[%s1651_s11] sm:$0xff] %v945_v28  ;;  %950 = vst [vmem:[%s1651_s11 + $0x8] sm:$0xff] %v946_v29  ;;  %v1067_v28 = vunpack.c.h.bf16 %v1404_v17  ;;  %v1082_v29 = vrot.slane %v1405_v22, %v1640_v52  ;;  %v1159_v8 = vmul.f32 %v1150_v3, %v1138_v2  ;;  %v1414_v17 = vld [vmem:[%s1978_s1 + $0x25] ss:$8 sm:$0x3] }
  0xcf   : > { %1060 = vst [vmem:[%s1651_s11 + $0x18] sm:$0xff] %v1056_v21  ;;  %v1085_v34 = vmul.f32 %v1078_v27, %v1064_v30  ;;  %v1186_v22 = vrot.slane %v1414_v17, %v1638_v51 }
  0xd0   : > { %v1088_v33 = vmul.f32 %v1082_v29, %v1067_v28  ;;  %v1086_v35 = vmul.f32 %v1082_v29, %v1065_v31  ;;  %v1163_v14 = vadd.f32 %v1159_v8, %v1127_v59  ;;  %v1416_v31 = vld [vmem:[%s1642_s6 + $0x168] sm:$0xff] }
  0xd2   : > { %1167 = vst [vmem:[%s1651_s11 + $0x10] sm:$0xff] %v1163_v14 }
  0xd5   : > { %v962_v42 = vld [vmem:[%s1651_s11] sm:$0xff]  ;;  %v963_v44 = vld [vmem:[%s1651_s11 + $0x8] sm:$0xff] }
  0xd6   : > { %v981_v47 = vadd.f32 %v977_v39, %v962_v42  ;;  %v982_v48 = vadd.f32 %v978_v40, %v963_v44  ;;  %v1092_v40 = vadd.f32 %v1088_v33, %v1056_v21  ;;  %v1406_v44 = vld [vmem:[%s1642_s6 + $0x130] sm:$0xff]  ;;  %v1174_v21 = vunpack.c.l.bf16 %v1413_v12 }
  0xd7   : > { %v1100_v49 = vunpack.c.l.bf16 %v1406_v44  ;;  %v1101_v50 = vunpack.c.h.bf16 %v1406_v44 }
  0xd8   : > { %985 = vst [vmem:[%s1651_s11] sm:$0xff] %v981_v47  ;;  %986 = vst [vmem:[%s1651_s11 + $0x8] sm:$0xff] %v982_v48  ;;  %v1103_v47 = vunpack.c.h.bf16 %v1407_v36  ;;  %v1118_v48 = vrot.slane %v1408_v41, %v1640_v52  ;;  %v1195_v27 = vmul.f32 %v1186_v22, %v1174_v21  ;;  %v1417_v36 = vld [vmem:[%s1978_s1 + $0x26] ss:$8 sm:$0x3] }
  0xd9   : > { %1096 = vst [vmem:[%s1651_s11 + $0x18] sm:$0xff] %v1092_v40  ;;  %v1121_v55 = vmul.f32 %v1114_v46, %v1100_v49  ;;  %v1222_v41 = vrot.slane %v1417_v36, %v1638_v51 }
  0xda   : > { %v1124_v54 = vmul.f32 %v1118_v48, %v1103_v47  ;;  %v1122_v56 = vmul.f32 %v1118_v48, %v1101_v50  ;;  %v1199_v33 = vadd.f32 %v1195_v27, %v1163_v14  ;;  %v1419_v50 = vld [vmem:[%s1642_s6 + $0x178] sm:$0xff] }
  0xdc   : > { %1203 = vst [vmem:[%s1651_s11 + $0x10] sm:$0xff] %v1199_v33 }
  0xdf   : > { %v998_v63 = vld [vmem:[%s1651_s11] sm:$0xff]  ;;  %v999_v1 = vld [vmem:[%s1651_s11 + $0x8] sm:$0xff] }
  0xe0   : > { %v1017_v4 = vadd.f32 %v1013_v60, %v998_v63  ;;  %v1018_v5 = vadd.f32 %v1014_v61, %v999_v1  ;;  %v1128_v61 = vadd.f32 %v1124_v54, %v1092_v40  ;;  %v1409_v1 = vld [vmem:[%s1642_s6 + $0x140] sm:$0xff]  ;;  %v1210_v40 = vunpack.c.l.bf16 %v1416_v31 }
  0xe1   : > { %v1136_v6 = vunpack.c.l.bf16 %v1409_v1  ;;  %v1137_v7 = vunpack.c.h.bf16 %v1409_v1 }
  0xe2   : > { %1021 = vst [vmem:[%s1651_s11] sm:$0xff] %v1017_v4  ;;  %1022 = vst [vmem:[%s1651_s11 + $0x8] sm:$0xff] %v1018_v5  ;;  %v1139_v4 = vunpack.c.h.bf16 %v1410_v57  ;;  %v1154_v5 = vrot.slane %v1411_v62, %v1640_v52  ;;  %v1231_v46 = vmul.f32 %v1222_v41, %v1210_v40  ;;  %v1420_v57 = vld [vmem:[%s1978_s1 + $0x27] ss:$8 sm:$0x3] }
  0xe3   : > { %1132 = vst [vmem:[%s1651_s11 + $0x18] sm:$0xff] %v1128_v61  ;;  %v1157_v10 = vmul.f32 %v1150_v3, %v1136_v6  ;;  %v1258_v62 = vrot.slane %v1420_v57, %v1638_v51 }
  0xe4   : > { %v1160_v9 = vmul.f32 %v1154_v5, %v1139_v4  ;;  %v1158_v11 = vmul.f32 %v1154_v5, %v1137_v7  ;;  %v1235_v54 = vadd.f32 %v1231_v46, %v1199_v33 }
  0xe6   : > { %1239 = vst [vmem:[%s1651_s11 + $0x10] sm:$0xff] %v1235_v54 }
  0xe9   : > { %v1034_v18 = vld [vmem:[%s1651_s11] sm:$0xff]  ;;  %v1035_v20 = vld [vmem:[%s1651_s11 + $0x8] sm:$0xff] }
  0xea   : > { %v1053_v23 = vadd.f32 %v1049_v15, %v1034_v18  ;;  %v1054_v24 = vadd.f32 %v1050_v16, %v1035_v20  ;;  %v1164_v16 = vadd.f32 %v1160_v9, %v1128_v61  ;;  %v1412_v20 = vld [vmem:[%s1642_s6 + $0x150] sm:$0xff]  ;;  %v1246_v61 = vunpack.c.l.bf16 %v1419_v50 }
  0xeb   : > { %v1172_v25 = vunpack.c.l.bf16 %v1412_v20  ;;  %v1173_v26 = vunpack.c.h.bf16 %v1412_v20 }
  0xec   : > { %1057 = vst [vmem:[%s1651_s11] sm:$0xff] %v1053_v23  ;;  %1058 = vst [vmem:[%s1651_s11 + $0x8] sm:$0xff] %v1054_v24  ;;  %v1175_v23 = vunpack.c.h.bf16 %v1413_v12  ;;  %v1190_v24 = vrot.slane %v1414_v17, %v1640_v52  ;;  %v1267_v3 = vmul.f32 %v1258_v62, %v1246_v61 }
  0xed   : > { %1168 = vst [vmem:[%s1651_s11 + $0x18] sm:$0xff] %v1164_v16  ;;  %v1193_v29 = vmul.f32 %v1186_v22, %v1172_v25 }
  0xee   : > { %v1196_v28 = vmul.f32 %v1190_v24, %v1175_v23  ;;  %v1194_v30 = vmul.f32 %v1190_v24, %v1173_v26  ;;  %v1271_v8 = vadd.f32 %v1267_v3, %v1235_v54 }
  0xf0   : > { %1275 = vst [vmem:[%s1651_s11 + $0x10] sm:$0xff] %v1271_v8 }
  0xf3   : > { %v1070_v37 = vld [vmem:[%s1651_s11] sm:$0xff]  ;;  %v1071_v39 = vld [vmem:[%s1651_s11 + $0x8] sm:$0xff] }
  0xf4   : > { %v1089_v42 = vadd.f32 %v1085_v34, %v1070_v37  ;;  %v1090_v43 = vadd.f32 %v1086_v35, %v1071_v39  ;;  %v1200_v35 = vadd.f32 %v1196_v28, %v1164_v16  ;;  %v1415_v39 = vld [vmem:[%s1642_s6 + $0x160] sm:$0xff] }
  0xf5   : > { %v1208_v44 = vunpack.c.l.bf16 %v1415_v39  ;;  %v1209_v45 = vunpack.c.h.bf16 %v1415_v39 }
  0xf6   : > { %1093 = vst [vmem:[%s1651_s11] sm:$0xff] %v1089_v42  ;;  %1094 = vst [vmem:[%s1651_s11 + $0x8] sm:$0xff] %v1090_v43  ;;  %v1211_v42 = vunpack.c.h.bf16 %v1416_v31  ;;  %v1226_v43 = vrot.slane %v1417_v36, %v1640_v52 }
  0xf7   : > { %1204 = vst [vmem:[%s1651_s11 + $0x18] sm:$0xff] %v1200_v35  ;;  %v1229_v48 = vmul.f32 %v1222_v41, %v1208_v44 }
  0xf8   : > { %v1232_v47 = vmul.f32 %v1226_v43, %v1211_v42  ;;  %v1230_v49 = vmul.f32 %v1226_v43, %v1209_v45 }
  0xfd   : > { %v1106_v58 = vld [vmem:[%s1651_s11] sm:$0xff]  ;;  %v1107_v60 = vld [vmem:[%s1651_s11 + $0x8] sm:$0xff] }
  0xfe   : > { %v1125_v63 = vadd.f32 %v1121_v55, %v1106_v58  ;;  %v1126_v0 = vadd.f32 %v1122_v56, %v1107_v60  ;;  %v1236_v56 = vadd.f32 %v1232_v47, %v1200_v35  ;;  %v1418_v60 = vld [vmem:[%s1642_s6 + $0x170] sm:$0xff] }
  0xff   : > { %v1244_v1 = vunpack.c.l.bf16 %v1418_v60  ;;  %v1245_v2 = vunpack.c.h.bf16 %v1418_v60 }
 0x100   : > { %1129 = vst [vmem:[%s1651_s11] sm:$0xff] %v1125_v63  ;;  %1130 = vst [vmem:[%s1651_s11 + $0x8] sm:$0xff] %v1126_v0  ;;  %v1247_v63 = vunpack.c.h.bf16 %v1419_v50  ;;  %v1262_v0 = vrot.slane %v1420_v57, %v1640_v52 }
 0x101   : > { %1240 = vst [vmem:[%s1651_s11 + $0x18] sm:$0xff] %v1236_v56  ;;  %v1265_v5 = vmul.f32 %v1258_v62, %v1244_v1 }
 0x102   : > { %v1268_v4 = vmul.f32 %v1262_v0, %v1247_v63  ;;  %v1266_v6 = vmul.f32 %v1262_v0, %v1245_v2 }
 0x107   : > { %v1142_v13 = vld [vmem:[%s1651_s11] sm:$0xff]  ;;  %v1143_v15 = vld [vmem:[%s1651_s11 + $0x8] sm:$0xff] }
 0x108   : > { %v1161_v18 = vadd.f32 %v1157_v10, %v1142_v13  ;;  %v1162_v19 = vadd.f32 %v1158_v11, %v1143_v15  ;;  %v1272_v10 = vadd.f32 %v1268_v4, %v1236_v56 }
 0x10a   : > { %1165 = vst [vmem:[%s1651_s11] sm:$0xff] %v1161_v18  ;;  %1166 = vst [vmem:[%s1651_s11 + $0x8] sm:$0xff] %v1162_v19 }
 0x10b   : > { %1276 = vst [vmem:[%s1651_s11 + $0x18] sm:$0xff] %v1272_v10 }
 0x111   : > { %v1178_v32 = vld [vmem:[%s1651_s11] sm:$0xff]  ;;  %v1179_v34 = vld [vmem:[%s1651_s11 + $0x8] sm:$0xff] }
 0x112   : > { %v1197_v37 = vadd.f32 %v1193_v29, %v1178_v32  ;;  %v1198_v38 = vadd.f32 %v1194_v30, %v1179_v34 }
 0x114   : > { %1201 = vst [vmem:[%s1651_s11] sm:$0xff] %v1197_v37  ;;  %1202 = vst [vmem:[%s1651_s11 + $0x8] sm:$0xff] %v1198_v38 }
 0x11b   : > { %v1214_v53 = vld [vmem:[%s1651_s11] sm:$0xff]  ;;  %v1215_v55 = vld [vmem:[%s1651_s11 + $0x8] sm:$0xff] }
 0x11c   : > { %v1233_v58 = vadd.f32 %v1229_v48, %v1214_v53  ;;  %v1234_v59 = vadd.f32 %v1230_v49, %v1215_v55 }
 0x11e   : > { %1237 = vst [vmem:[%s1651_s11] sm:$0xff] %v1233_v58  ;;  %1238 = vst [vmem:[%s1651_s11 + $0x8] sm:$0xff] %v1234_v59 }
 0x125   : > { %v1250_v7 = vld [vmem:[%s1651_s11] sm:$0xff]  ;;  %v1251_v9 = vld [vmem:[%s1651_s11 + $0x8] sm:$0xff] }
 0x126   : > { %v1269_v51 = vadd.f32 %v1265_v5, %v1250_v7  ;;  %v1270_v11 = vadd.f32 %v1266_v6, %v1251_v9 }
 0x128   : > { %1273 = vst [vmem:[%s1651_s11] sm:$0xff] %v1269_v51  ;;  %1274 = vst [vmem:[%s1651_s11 + $0x8] sm:$0xff] %v1270_v11 }
 0x129 PF: > { %p10_p9 = scmp.ge.s32.totalorder %s1513_s16, 4   ;;  %s1981_s12 = smov %s1470_s13 }
 0x12a   : > { %s1982_s13 = smov %s1522_s19  ;;  %s1983_s14 = smov %s1513_s16 }
 0x12b   :  { %12 = sbr.rel (!%p10_p9) target bundleno = 2 (0x2), region = 151 }

</bundles_post_ra>
